<compile_context>
chip_gen: v6e
topology: v6e:2x2x1
jax: 0.10.0
libtpu: 0.0.40
codegen_flags: <defaults>
</compile_context>

<pallas_src>
import functools

import jax
import jax.numpy as jnp
from jax.experimental import pallas as pl
from jax.experimental.pallas import tpu as pltpu


# ---------------------------------------------------------------------------
# Fused forward kernel: conv1 -> conv2 -> conv3 -> fc1 -> fc2, one GEMM per
# layer, everything resident in VMEM / vregs for the current batch tile.
# ---------------------------------------------------------------------------
def _critic_fused_kernel(p1_ref, w1_ref, b1_ref, w2_ref, b2_ref, w3_ref, b3_ref,
                         fw1_ref, fb1_ref, fw2_ref, fb2_ref, o_ref,
                         *, bt, taps2, pos2):
    """One batch tile (bt rows of the final output).

    p1_ref : (taps2 * pos2 * bt, k1*k1*Cin) bf16 -- conv1 patches, rows ordered
             (conv2 tap, conv2 output position, batch), i.e. already duplicated
             per conv2 tap so conv2's im2col LHS is a pure lane-concat of
             contiguous row blocks (no in-kernel gather / strided slices).
    """
    f32 = jnp.float32
    bf16 = jnp.bfloat16

    # ---- conv1: ONE GEMM over the tap-duplicated patch rows (K = k1*k1*Cin) --
    a1 = jnp.dot(p1_ref[...], w1_ref[...], preferred_element_type=f32)
    a1 = jnp.maximum(a1 + b1_ref[...], 0.0).astype(bf16)      # (taps2*pos2*bt, 32)

    # ---- conv2: im2col LHS = lane-concat of the 16 tap row blocks, ONE GEMM --
    r2 = pos2 * bt
    lhs2 = jnp.concatenate(
        [a1[t * r2:(t + 1) * r2, :] for t in range(taps2)], axis=1)  # (pos2*bt, 512)
    a2 = jnp.dot(lhs2, w2_ref[...], preferred_element_type=f32)
    a2 = jnp.maximum(a2 + b2_ref[...], 0.0).astype(bf16)       # (pos2*bt, 64)

    # ---- conv3 (1x1 spatial output): LHS = lane-concat of the pos2 position
    #      row blocks, ONE GEMM with K = pos2*64 = 576. ------------------------
    lhs3 = jnp.concatenate(
        [a2[p * bt:(p + 1) * bt, :] for p in range(pos2)], axis=1)   # (bt, 576)
    a3 = jnp.dot(lhs3, w3_ref[...], preferred_element_type=f32)
    a3 = jnp.maximum(a3 + b3_ref[...], 0.0).astype(bf16)       # (bt, 64)

    # ---- fc1 + ReLU ----------------------------------------------------------
    h = jnp.dot(a3, fw1_ref[...], preferred_element_type=f32)
    h = jnp.maximum(h + fb1_ref[...], 0.0)                     # (bt, 512) f32

    # ---- fc2: single output column -> VPU multiply + lane reduction (no
    #      zero-padded MXU pass); the store stays lane-dense (bt, 128). --------
    v = jnp.sum(h * fw2_ref[...], axis=-1, keepdims=True) + fb2_ref[...]   # (bt, 1)
    col = jax.lax.broadcasted_iota(jnp.int32, (bt, 128), 1)
    o_ref[...] = jnp.where(col == 0, v, 0.0).astype(o_ref.dtype)


# ---------------------------------------------------------------------------
# Parameter prep: PyTorch-layout params -> GEMM layouts used by the kernel.
# ---------------------------------------------------------------------------
def prepare_params(params, input_hw):
    H, W = input_hw
    o1, cin, k1, _ = params["c1_w"].shape
    o2, _, k2, _ = params["c2_w"].shape
    o3, _, k3, _ = params["c3_w"].shape
    s1, s2, s3 = 4, 2, 1                                   # strides from CriticModel
    oh1, ow1 = (H - k1) // s1 + 1, (W - k1) // s1 + 1
    oh2, ow2 = (oh1 - k2) // s2 + 1, (ow1 - k2) // s2 + 1
    oh3, ow3 = (oh2 - k3) // s3 + 1, (ow2 - k3) // s3 + 1
    nf1 = params["fc1_w"].shape[1]
    # TODO(synk): the kernel's conv3 stage assumes a 1x1 spatial output (true for
    # this 36x36 input); non-1x1 conv3 grids (e.g. 84x84 Atari) need the same
    # tap-duplicated row ordering for a2 that conv2 uses, or an in-kernel gather.
    assert oh3 == 1 and ow3 == 1, "kernel specialised to 1x1 conv3 output"
    assert params["fc1_w"].shape[0] == o3 * oh3 * ow3

    bf16, f32 = jnp.bfloat16, jnp.float32

    # Identity "patch extraction" conv kernel: output feature f = (kh*k1+kw)*C + c.
    pk = cin * k1 * k1
    patch_w = jnp.eye(pk, dtype=f32).reshape(k1, k1, cin, pk)

    # conv weights -> GEMM layouts, rows ordered (kh, kw, cin); bf16 MXU operands.
    w1 = jnp.transpose(params["c1_w"], (2, 3, 1, 0)).reshape(k1 * k1 * cin, o1)
    w2 = jnp.transpose(params["c2_w"], (2, 3, 1, 0)).reshape(k2 * k2 * o1, o2)
    w3 = jnp.transpose(params["c3_w"], (2, 3, 1, 0)).reshape(k3 * k3 * o2, o3)
    # fc1: with a 1x1 conv3 output, PyTorch's NCHW flatten is plain channel order.
    fw1 = params["fc1_w"]
    # fc2: single column kept as a (1, 512) f32 row for the in-kernel VPU reduce.
    fw2 = params["fc2_w"].reshape(1, nf1).astype(f32)
    fb2 = params["fc2_b"].reshape(1, 1).astype(f32)

    gp = {
        "patch_w": patch_w,
        "w1": w1.astype(bf16), "b1": params["c1_b"].reshape(1, o1).astype(f32),
        "w2": w2.astype(bf16), "b2": params["c2_b"].reshape(1, o2).astype(f32),
        "w3": w3.astype(bf16), "b3": params["c3_b"].reshape(1, o3).astype(f32),
        "fw1": fw1.astype(bf16), "fb1": params["fc1_b"].reshape(1, nf1).astype(f32),
        "fw2": fw2, "fb2": fb2,
    }
    dims = (k1, s1, oh1, ow1, k2, s2, oh2, ow2, k3, s3, oh3, ow3)
    return gp, dims


# ---------------------------------------------------------------------------
# Full CriticModel forward (wrapper: patch layout glue + one fused pallas_call).
# ---------------------------------------------------------------------------
@functools.partial(jax.jit, static_argnums=(2,))
def critic_forward(x_nchw, gp, dims):
    (k1, s1, oh1, ow1, k2, s2, oh2, ow2, k3, s3, oh3, ow3) = dims
    B = x_nchw.shape[0]
    taps2, pos2 = k2 * k2, oh2 * ow2

    # Batch tile: one grid step per tile, weights stay VMEM-resident.  64 rows
    # keeps the double-buffered p1 tile (~9 MiB bf16) well inside v7x's 64 MiB.
    bt = B if B <= 64 else 64
    nbt = -(-B // bt)
    B_pad = nbt * bt

    # ---- conv1 patch extraction: single XLA identity-kernel conv -------------
    x = jnp.transpose(x_nchw, (0, 2, 3, 1))                    # NCHW -> NHWC
    patches = jax.lax.conv_general_dilated(
        x, gp["patch_w"], window_strides=(s1, s1), padding="VALID",
        dimension_numbers=("NHWC", "HWIO", "NHWC"))            # (B, oh1, ow1, k1*k1*C)
    patches = patches.astype(jnp.bfloat16)
    if B_pad != B:
        patches = jnp.pad(patches, ((0, B_pad - B), (0, 0), (0, 0), (0, 0)))
    K1 = patches.shape[-1]

    # ---- conv2-tap duplication: rows ordered (tile, tap2, pos2, batch). -------
    # One fused XLA gather/copy (~2.25x patch bytes); this removes ALL gather /
    # relayout work from the kernel except two contiguous lane-concats.
    # TODO(synk): an in-kernel strided-DMA gather from the HBM patch buffer would
    # remove this duplicated HBM round trip entirely.
    taps = []
    for ki in range(k2):
        for kj in range(k2):
            taps.append(patches[:, ki:ki + (oh2 - 1) * s2 + 1:s2,
                                   kj:kj + (ow2 - 1) * s2 + 1:s2, :])
    p1 = jnp.stack(taps, axis=0)                               # (taps2, B_pad, oh2, ow2, K1)
    p1 = p1.reshape(taps2, nbt, bt, oh2, ow2, K1)
    p1 = jnp.transpose(p1, (1, 0, 3, 4, 2, 5))                 # (nbt, taps2, oh2, ow2, bt, K1)
    rows_per_tile = taps2 * pos2 * bt
    p1 = p1.reshape(nbt * rows_per_tile, K1)

    kernel = functools.partial(_critic_fused_kernel, bt=bt, taps2=taps2, pos2=pos2)
    const2 = lambda i: (0, 0)
    in_specs = [
        pl.BlockSpec((rows_per_tile, K1), lambda i: (i, 0)),   # patch rows: batch-tiled
        pl.BlockSpec(gp["w1"].shape, const2),                  # weights/biases: resident
        pl.BlockSpec(gp["b1"].shape, const2),
        pl.BlockSpec(gp["w2"].shape, const2),
        pl.BlockSpec(gp["b2"].shape, const2),
        pl.BlockSpec(gp["w3"].shape, const2),
        pl.BlockSpec(gp["b3"].shape, const2),
        pl.BlockSpec(gp["fw1"].shape, const2),
        pl.BlockSpec(gp["fb1"].shape, const2),
        pl.BlockSpec(gp["fw2"].shape, const2),
        pl.BlockSpec(gp["fb2"].shape, const2),
    ]
    out = pl.pallas_call(
        kernel,
        out_shape=jax.ShapeDtypeStruct((B_pad, 128), jnp.float32),
        grid=(nbt,),
        in_specs=in_specs,
        out_specs=pl.BlockSpec((bt, 128), lambda i: (i, 0)),
        compiler_params=pltpu.CompilerParams(
            dimension_semantics=("parallel",),   # v7x: shard batch tiles over 2 TCs
            vmem_limit_bytes=32 * 1024 * 1024),
    )(p1, gp["w1"], gp["b1"], gp["w2"], gp["b2"], gp["w3"], gp["b3"],
      gp["fw1"], gp["fb1"], gp["fw2"], gp["fb2"])
    return out[:B, :1]                                         # (B, 1)


# ---------------------------------------------------------------------------
# Pure-JAX reference (for a correctness sanity check)
# ---------------------------------------------------------------------------
def _ref_forward(x_nchw, params):
    def conv(x, w, b, s):
        y = jax.lax.conv_general_dilated(
            x, jnp.transpose(w, (2, 3, 1, 0)),                 # OIHW -> HWIO
            window_strides=(s, s), padding="VALID",
            dimension_numbers=("NHWC", "HWIO", "NHWC"))
        return jnp.maximum(y + b, 0.0)

    x = jnp.transpose(x_nchw, (0, 2, 3, 1))
    x = conv(x, params["c1_w"], params["c1_b"], 4)
    x = conv(x, params["c2_w"], params["c2_b"], 2)
    x = conv(x, params["c3_w"], params["c3_b"], 1)
    n = x.shape[0]
    x = jnp.transpose(x, (0, 3, 1, 2)).reshape(n, -1)          # PyTorch NCHW flatten
    x = jnp.maximum(x @ params["fc1_w"] + params["fc1_b"], 0.0)
    return x @ params["fc2_w"] + params["fc2_b"]


# ---------------------------------------------------------------------------
# Deterministic synthetic parameters (shapes from CriticModel.__init__)
# ---------------------------------------------------------------------------
def make_params(in_channels, feat_size, key):
    ks = jax.random.split(key, 10)
    s = 0.05
    return {
        "c1_w": s * jax.random.normal(ks[0], (32, in_channels, 8, 8), jnp.float32),
        "c1_b": s * jax.random.normal(ks[1], (32,), jnp.float32),
        "c2_w": s * jax.random.normal(ks[2], (64, 32, 4, 4), jnp.float32),
        "c2_b": s * jax.random.normal(ks[3], (64,), jnp.float32),
        "c3_w": s * jax.random.normal(ks[4], (64, 64, 3, 3), jnp.float32),
        "c3_b": s * jax.random.normal(ks[5], (64,), jnp.float32),
        "fc1_w": s * jax.random.normal(ks[6], (feat_size, 512), jnp.float32),
        "fc1_b": s * jax.random.normal(ks[7], (512,), jnp.float32),
        "fc2_w": s * jax.random.normal(ks[8], (512, 1), jnp.float32),
        "fc2_b": s * jax.random.normal(ks[9], (1,), jnp.float32),
    }


if __name__ == "__main__":
    # Small Atari-like input: batch=8, channels=4, spatial=36x36.
    # Conv stack: 36 -> 8 -> 3 -> 1, so features_size() = 64*1*1 = 64.
    # batch=8 keeps every row slice / block sublane-aligned (8-multiples).
    B, C, S = 8, 4, 36
    feat_size = 64

    key = jax.random.PRNGKey(0)
    k_x, k_p = jax.random.split(key)
    x = jax.random.normal(k_x, (B, C, S, S), jnp.float32)
    params = make_params(C, feat_size, k_p)
    gparams, dims = prepare_params(params, (S, S))

    out = jax.block_until_ready(critic_forward(x, gparams, dims))
    assert out.shape == (B, 1), out.shape

    ref = jax.block_until_ready(_ref_forward(x, params))
    # Slightly relaxed tolerance: MXU operands are intentionally bf16 (f32 accum).
    assert jnp.allclose(out, ref, rtol=2e-2, atol=2e-2), (out, ref)

    print("KERNEL_OK")
</pallas_src>

<mosaic_0001>
module attributes {stable_mosaic.version = 11 : i64} {
  func.func @_critic_fused_kernel(%arg0: i32, %arg1: memref<1152x256xbf16, #tpu.memory_space<vmem>>, %arg2: memref<256x32xbf16, #tpu.memory_space<vmem>>, %arg3: memref<1x32xf32, #tpu.memory_space<vmem>>, %arg4: memref<512x64xbf16, #tpu.memory_space<vmem>>, %arg5: memref<1x64xf32, #tpu.memory_space<vmem>>, %arg6: memref<576x64xbf16, #tpu.memory_space<vmem>>, %arg7: memref<1x64xf32, #tpu.memory_space<vmem>>, %arg8: memref<64x512xbf16, #tpu.memory_space<vmem>>, %arg9: memref<1x512xf32, #tpu.memory_space<vmem>>, %arg10: memref<1x512xf32, #tpu.memory_space<vmem>>, %arg11: memref<1x1xf32, #tpu.memory_space<vmem>>, %arg12: memref<8x128xf32, #tpu.memory_space<vmem>>) attributes {dimension_semantics = [#tpu.dimension_semantics<parallel>], iteration_bounds = array<i64: 1>, scalar_prefetch = 0 : i64, scratch_operands = 0 : i64, tpu.core_type = #tpu.core_type<tc>, window_params = [{transform_indices = @transform_0, window_bounds = array<i64: 1152, 256>}, {pipeline_mode = #tpu.pipeline_mode<synchronous>, transform_indices = @transform_1, window_bounds = array<i64: 256, 32>}, {pipeline_mode = #tpu.pipeline_mode<synchronous>, transform_indices = @transform_2, window_bounds = array<i64: 1, 32>}, {pipeline_mode = #tpu.pipeline_mode<synchronous>, transform_indices = @transform_3, window_bounds = array<i64: 512, 64>}, {pipeline_mode = #tpu.pipeline_mode<synchronous>, transform_indices = @transform_4, window_bounds = array<i64: 1, 64>}, {pipeline_mode = #tpu.pipeline_mode<synchronous>, transform_indices = @transform_5, window_bounds = array<i64: 576, 64>}, {pipeline_mode = #tpu.pipeline_mode<synchronous>, transform_indices = @transform_6, window_bounds = array<i64: 1, 64>}, {pipeline_mode = #tpu.pipeline_mode<synchronous>, transform_indices = @transform_7, window_bounds = array<i64: 64, 512>}, {pipeline_mode = #tpu.pipeline_mode<synchronous>, transform_indices = @transform_8, window_bounds = array<i64: 1, 512>}, {pipeline_mode = #tpu.pipeline_mode<synchronous>, transform_indices = @transform_9, window_bounds = array<i64: 1, 512>}, {pipeline_mode = #tpu.pipeline_mode<synchronous>, transform_indices = @transform_10, window_bounds = array<i64: 1, 1>}, {transform_indices = @transform_11, window_bounds = array<i64: 8, 128>}]} {
    %c0 = arith.constant 0 : index
    %c0_0 = arith.constant 0 : index
    %0 = vector.load %arg1[%c0, %c0_0] : memref<1152x256xbf16, #tpu.memory_space<vmem>>, vector<1152x256xbf16>
    %c0_1 = arith.constant 0 : index
    %c0_2 = arith.constant 0 : index
    %1 = vector.load %arg2[%c0_1, %c0_2] : memref<256x32xbf16, #tpu.memory_space<vmem>>, vector<256x32xbf16>
    %cst = arith.constant dense<0.000000e+00> : vector<1152x32xf32>
    %2 = tpu.matmul %0, %1, %cst {dimension_numbers = #tpu.dot_dimension_numbers<[1], [0], [0], [1], [0, 0, 1, 1], [], []>} : vector<1152x256xbf16>, vector<256x32xbf16>, vector<1152x32xf32> -> vector<1152x32xf32>
    %c0_3 = arith.constant 0 : index
    %c0_4 = arith.constant 0 : index
    %3 = vector.load %arg3[%c0_3, %c0_4] : memref<1x32xf32, #tpu.memory_space<vmem>>, vector<1x32xf32>
    %4 = vector.broadcast %3 : vector<1x32xf32> to vector<1152x32xf32>
    %5 = arith.addf %2, %4 : vector<1152x32xf32>
    %cst_5 = arith.constant 0.000000e+00 : f32
    %6 = vector.broadcast %cst_5 : f32 to vector<1152x32xf32>
    %7 = arith.maximumf %5, %6 : vector<1152x32xf32>
    %8 = arith.truncf %7 : vector<1152x32xf32> to vector<1152x32xbf16>
    %9 = vector.extract_strided_slice %8 {offsets = [0, 0], sizes = [72, 32], strides = [1, 1]} : vector<1152x32xbf16> to vector<72x32xbf16>
    %10 = vector.extract_strided_slice %8 {offsets = [72, 0], sizes = [72, 32], strides = [1, 1]} : vector<1152x32xbf16> to vector<72x32xbf16>
    %11 = vector.extract_strided_slice %8 {offsets = [144, 0], sizes = [72, 32], strides = [1, 1]} : vector<1152x32xbf16> to vector<72x32xbf16>
    %12 = vector.extract_strided_slice %8 {offsets = [216, 0], sizes = [72, 32], strides = [1, 1]} : vector<1152x32xbf16> to vector<72x32xbf16>
    %13 = vector.extract_strided_slice %8 {offsets = [288, 0], sizes = [72, 32], strides = [1, 1]} : vector<1152x32xbf16> to vector<72x32xbf16>
    %14 = vector.extract_strided_slice %8 {offsets = [360, 0], sizes = [72, 32], strides = [1, 1]} : vector<1152x32xbf16> to vector<72x32xbf16>
    %15 = vector.extract_strided_slice %8 {offsets = [432, 0], sizes = [72, 32], strides = [1, 1]} : vector<1152x32xbf16> to vector<72x32xbf16>
    %16 = vector.extract_strided_slice %8 {offsets = [504, 0], sizes = [72, 32], strides = [1, 1]} : vector<1152x32xbf16> to vector<72x32xbf16>
    %17 = vector.extract_strided_slice %8 {offsets = [576, 0], sizes = [72, 32], strides = [1, 1]} : vector<1152x32xbf16> to vector<72x32xbf16>
    %18 = vector.extract_strided_slice %8 {offsets = [648, 0], sizes = [72, 32], strides = [1, 1]} : vector<1152x32xbf16> to vector<72x32xbf16>
    %19 = vector.extract_strided_slice %8 {offsets = [720, 0], sizes = [72, 32], strides = [1, 1]} : vector<1152x32xbf16> to vector<72x32xbf16>
    %20 = vector.extract_strided_slice %8 {offsets = [792, 0], sizes = [72, 32], strides = [1, 1]} : vector<1152x32xbf16> to vector<72x32xbf16>
    %21 = vector.extract_strided_slice %8 {offsets = [864, 0], sizes = [72, 32], strides = [1, 1]} : vector<1152x32xbf16> to vector<72x32xbf16>
    %22 = vector.extract_strided_slice %8 {offsets = [936, 0], sizes = [72, 32], strides = [1, 1]} : vector<1152x32xbf16> to vector<72x32xbf16>
    %23 = vector.extract_strided_slice %8 {offsets = [1008, 0], sizes = [72, 32], strides = [1, 1]} : vector<1152x32xbf16> to vector<72x32xbf16>
    %24 = vector.extract_strided_slice %8 {offsets = [1080, 0], sizes = [72, 32], strides = [1, 1]} : vector<1152x32xbf16> to vector<72x32xbf16>
    %25 = tpu.concatenate %9, %10, %11, %12, %13, %14, %15, %16, %17, %18, %19, %20, %21, %22, %23, %24 in 1 : vector<72x32xbf16>, vector<72x32xbf16>, vector<72x32xbf16>, vector<72x32xbf16>, vector<72x32xbf16>, vector<72x32xbf16>, vector<72x32xbf16>, vector<72x32xbf16>, vector<72x32xbf16>, vector<72x32xbf16>, vector<72x32xbf16>, vector<72x32xbf16>, vector<72x32xbf16>, vector<72x32xbf16>, vector<72x32xbf16>, vector<72x32xbf16> -> vector<72x512xbf16>
    %c0_6 = arith.constant 0 : index
    %c0_7 = arith.constant 0 : index
    %26 = vector.load %arg4[%c0_6, %c0_7] : memref<512x64xbf16, #tpu.memory_space<vmem>>, vector<512x64xbf16>
    %cst_8 = arith.constant dense<0.000000e+00> : vector<72x64xf32>
    %27 = tpu.matmul %25, %26, %cst_8 {dimension_numbers = #tpu.dot_dimension_numbers<[1], [0], [0], [1], [0, 0, 1, 1], [], []>} : vector<72x512xbf16>, vector<512x64xbf16>, vector<72x64xf32> -> vector<72x64xf32>
    %c0_9 = arith.constant 0 : index
    %c0_10 = arith.constant 0 : index
    %28 = vector.load %arg5[%c0_9, %c0_10] : memref<1x64xf32, #tpu.memory_space<vmem>>, vector<1x64xf32>
    %29 = vector.broadcast %28 : vector<1x64xf32> to vector<72x64xf32>
    %30 = arith.addf %27, %29 : vector<72x64xf32>
    %cst_11 = arith.constant 0.000000e+00 : f32
    %31 = vector.broadcast %cst_11 : f32 to vector<72x64xf32>
    %32 = arith.maximumf %30, %31 : vector<72x64xf32>
    %33 = arith.truncf %32 : vector<72x64xf32> to vector<72x64xbf16>
    %34 = vector.extract_strided_slice %33 {offsets = [0, 0], sizes = [8, 64], strides = [1, 1]} : vector<72x64xbf16> to vector<8x64xbf16>
    %35 = vector.extract_strided_slice %33 {offsets = [8, 0], sizes = [8, 64], strides = [1, 1]} : vector<72x64xbf16> to vector<8x64xbf16>
    %36 = vector.extract_strided_slice %33 {offsets = [16, 0], sizes = [8, 64], strides = [1, 1]} : vector<72x64xbf16> to vector<8x64xbf16>
    %37 = vector.extract_strided_slice %33 {offsets = [24, 0], sizes = [8, 64], strides = [1, 1]} : vector<72x64xbf16> to vector<8x64xbf16>
    %38 = vector.extract_strided_slice %33 {offsets = [32, 0], sizes = [8, 64], strides = [1, 1]} : vector<72x64xbf16> to vector<8x64xbf16>
    %39 = vector.extract_strided_slice %33 {offsets = [40, 0], sizes = [8, 64], strides = [1, 1]} : vector<72x64xbf16> to vector<8x64xbf16>
    %40 = vector.extract_strided_slice %33 {offsets = [48, 0], sizes = [8, 64], strides = [1, 1]} : vector<72x64xbf16> to vector<8x64xbf16>
    %41 = vector.extract_strided_slice %33 {offsets = [56, 0], sizes = [8, 64], strides = [1, 1]} : vector<72x64xbf16> to vector<8x64xbf16>
    %42 = vector.extract_strided_slice %33 {offsets = [64, 0], sizes = [8, 64], strides = [1, 1]} : vector<72x64xbf16> to vector<8x64xbf16>
    %43 = tpu.concatenate %34, %35, %36, %37, %38, %39, %40, %41, %42 in 1 : vector<8x64xbf16>, vector<8x64xbf16>, vector<8x64xbf16>, vector<8x64xbf16>, vector<8x64xbf16>, vector<8x64xbf16>, vector<8x64xbf16>, vector<8x64xbf16>, vector<8x64xbf16> -> vector<8x576xbf16>
    %c0_12 = arith.constant 0 : index
    %c0_13 = arith.constant 0 : index
    %44 = vector.load %arg6[%c0_12, %c0_13] : memref<576x64xbf16, #tpu.memory_space<vmem>>, vector<576x64xbf16>
    %cst_14 = arith.constant dense<0.000000e+00> : vector<8x64xf32>
    %45 = tpu.matmul %43, %44, %cst_14 {dimension_numbers = #tpu.dot_dimension_numbers<[1], [0], [0], [1], [0, 0, 1, 1], [], []>} : vector<8x576xbf16>, vector<576x64xbf16>, vector<8x64xf32> -> vector<8x64xf32>
    %c0_15 = arith.constant 0 : index
    %c0_16 = arith.constant 0 : index
    %46 = vector.load %arg7[%c0_15, %c0_16] : memref<1x64xf32, #tpu.memory_space<vmem>>, vector<1x64xf32>
    %47 = vector.broadcast %46 : vector<1x64xf32> to vector<8x64xf32>
    %48 = arith.addf %45, %47 : vector<8x64xf32>
    %cst_17 = arith.constant 0.000000e+00 : f32
    %49 = vector.broadcast %cst_17 : f32 to vector<8x64xf32>
    %50 = arith.maximumf %48, %49 : vector<8x64xf32>
    %51 = arith.truncf %50 : vector<8x64xf32> to vector<8x64xbf16>
    %c0_18 = arith.constant 0 : index
    %c0_19 = arith.constant 0 : index
    %52 = vector.load %arg8[%c0_18, %c0_19] : memref<64x512xbf16, #tpu.memory_space<vmem>>, vector<64x512xbf16>
    %cst_20 = arith.constant dense<0.000000e+00> : vector<8x512xf32>
    %53 = tpu.matmul %51, %52, %cst_20 {dimension_numbers = #tpu.dot_dimension_numbers<[1], [0], [0], [1], [0, 0, 1, 1], [], []>} : vector<8x64xbf16>, vector<64x512xbf16>, vector<8x512xf32> -> vector<8x512xf32>
    %c0_21 = arith.constant 0 : index
    %c0_22 = arith.constant 0 : index
    %54 = vector.load %arg9[%c0_21, %c0_22] : memref<1x512xf32, #tpu.memory_space<vmem>>, vector<1x512xf32>
    %55 = vector.broadcast %54 : vector<1x512xf32> to vector<8x512xf32>
    %56 = arith.addf %53, %55 : vector<8x512xf32>
    %cst_23 = arith.constant 0.000000e+00 : f32
    %57 = vector.broadcast %cst_23 : f32 to vector<8x512xf32>
    %58 = arith.maximumf %56, %57 : vector<8x512xf32>
    %c0_24 = arith.constant 0 : index
    %c0_25 = arith.constant 0 : index
    %59 = vector.load %arg10[%c0_24, %c0_25] : memref<1x512xf32, #tpu.memory_space<vmem>>, vector<1x512xf32>
    %60 = vector.broadcast %59 : vector<1x512xf32> to vector<8x512xf32>
    %61 = arith.mulf %58, %60 : vector<8x512xf32>
    %cst_26 = arith.constant dense<0.000000e+00> : vector<8xf32>
    %62 = vector.multi_reduction <add>, %61, %cst_26 [1] : vector<8x512xf32> to vector<8xf32>
    %63 = vector.shape_cast %62 : vector<8xf32> to vector<8x1xf32>
    %c0_27 = arith.constant 0 : index
    %c0_28 = arith.constant 0 : index
    %64 = vector.load %arg11[%c0_27, %c0_28] : memref<1x1xf32, #tpu.memory_space<vmem>>, vector<1x1xf32>
    %65 = vector.broadcast %64 : vector<1x1xf32> to vector<8x1xf32>
    %66 = arith.addf %63, %65 : vector<8x1xf32>
    %67 = tpu.iota {dimensions = array<i32: 1>} : vector<8x128xi32>
    %c0_i32 = arith.constant 0 : i32
    %68 = vector.broadcast %c0_i32 : i32 to vector<8x128xi32>
    %69 = arith.cmpi eq, %67, %68 : vector<8x128xi32>
    %cst_29 = arith.constant 0.000000e+00 : f32
    %70 = vector.shape_cast %66 : vector<8x1xf32> to vector<8x1xf32>
    %71 = vector.broadcast %70 : vector<8x1xf32> to vector<8x128xf32>
    %72 = vector.broadcast %cst_29 : f32 to vector<8x128xf32>
    %73 = arith.select %69, %71, %72 : vector<8x128xi1>, vector<8x128xf32>
    %c0_30 = arith.constant 0 : index
    %c0_31 = arith.constant 0 : index
    %74 = vector.load %arg12[%c0_30, %c0_31] : memref<8x128xf32, #tpu.memory_space<vmem>>, vector<8x128xf32>
    tpu.vector_store %arg12[%c0_30, %c0_31], %73 {strides = array<i32>} : memref<8x128xf32, #tpu.memory_space<vmem>>, vector<8x128xf32>,
    return
  }
  func.func @transform_0(%arg0: i32) -> (i32, i32) {
    %c0_i32 = arith.constant 0 : i32
    %c0_i32_0 = arith.constant 0 : i32
    return %arg0, %c0_i32 : i32, i32
  }
  func.func @transform_1(%arg0: i32) -> (i32, i32) {
    %c0_i32 = arith.constant 0 : i32
    %c0_i32_0 = arith.constant 0 : i32
    %c0_i32_1 = arith.constant 0 : i32
    return %c0_i32, %c0_i32_0 : i32, i32
  }
  func.func @transform_2(%arg0: i32) -> (i32, i32) {
    %c0_i32 = arith.constant 0 : i32
    %c0_i32_0 = arith.constant 0 : i32
    %c0_i32_1 = arith.constant 0 : i32
    return %c0_i32, %c0_i32_0 : i32, i32
  }
  func.func @transform_3(%arg0: i32) -> (i32, i32) {
    %c0_i32 = arith.constant 0 : i32
    %c0_i32_0 = arith.constant 0 : i32
    %c0_i32_1 = arith.constant 0 : i32
    return %c0_i32, %c0_i32_0 : i32, i32
  }
  func.func @transform_4(%arg0: i32) -> (i32, i32) {
    %c0_i32 = arith.constant 0 : i32
    %c0_i32_0 = arith.constant 0 : i32
    %c0_i32_1 = arith.constant 0 : i32
    return %c0_i32, %c0_i32_0 : i32, i32
  }
  func.func @transform_5(%arg0: i32) -> (i32, i32) {
    %c0_i32 = arith.constant 0 : i32
    %c0_i32_0 = arith.constant 0 : i32
    %c0_i32_1 = arith.constant 0 : i32
    return %c0_i32, %c0_i32_0 : i32, i32
  }
  func.func @transform_6(%arg0: i32) -> (i32, i32) {
    %c0_i32 = arith.constant 0 : i32
    %c0_i32_0 = arith.constant 0 : i32
    %c0_i32_1 = arith.constant 0 : i32
    return %c0_i32, %c0_i32_0 : i32, i32
  }
  func.func @transform_7(%arg0: i32) -> (i32, i32) {
    %c0_i32 = arith.constant 0 : i32
    %c0_i32_0 = arith.constant 0 : i32
    %c0_i32_1 = arith.constant 0 : i32
    return %c0_i32, %c0_i32_0 : i32, i32
  }
  func.func @transform_8(%arg0: i32) -> (i32, i32) {
    %c0_i32 = arith.constant 0 : i32
    %c0_i32_0 = arith.constant 0 : i32
    %c0_i32_1 = arith.constant 0 : i32
    return %c0_i32, %c0_i32_0 : i32, i32
  }
  func.func @transform_9(%arg0: i32) -> (i32, i32) {
    %c0_i32 = arith.constant 0 : i32
    %c0_i32_0 = arith.constant 0 : i32
    %c0_i32_1 = arith.constant 0 : i32
    return %c0_i32, %c0_i32_0 : i32, i32
  }
  func.func @transform_10(%arg0: i32) -> (i32, i32) {
    %c0_i32 = arith.constant 0 : i32
    %c0_i32_0 = arith.constant 0 : i32
    %c0_i32_1 = arith.constant 0 : i32
    return %c0_i32, %c0_i32_0 : i32, i32
  }
  func.func @transform_11(%arg0: i32) -> (i32, i32) {
    %c0_i32 = arith.constant 0 : i32
    %c0_i32_0 = arith.constant 0 : i32
    return %arg0, %c0_i32 : i32, i32
  }
}

</mosaic_0001>

<bundles_post_ra>
// kernel: critic_forward.1
= control target key start
LH: loop header
LB: loop body
LE: loop exit
PB: predicated region body
PF: predicated region fallthrough
CT: control target
= control target key end

     0   :  { %v5642_v0 = vmov 0   ;;  %vm1870_vm0 = vcmask 1043456   ;;  %s4180_s22 = smov 32   ;;  %s4181_s16 = smov 64   ;;  %vm2114_vm1 = vcmask 261120   ;;  %vm2130_vm2 = vcmask 523264   ;;  %s5630_s1 = inlined_call_operand.vmem [shape: bf16[256,32], index: 1, kind: input, shape index: {}]   ;;  %s5631_s0 = inlined_call_operand.vmem [shape: bf16[1152,256], index: 0, kind: input, shape index: {}]   ;;  %s5632_s2 = inlined_call_operand.vmem [shape: f32[1,32], index: 2, kind: input, shape index: {}]   ;;  %s5633_s3 = inlined_call_operand.vmem [shape: bf16[512,64], index: 3, kind: input, shape index: {}]   ;;  %s5634_s5 = inlined_call_operand.vmem [shape: bf16[576,64], index: 5, kind: input, shape index: {}]   ;;  %s5635_s4 = inlined_call_operand.vmem [shape: f32[1,64], index: 4, kind: input, shape index: {}]   ;;  %s5636_s7 = inlined_call_operand.vmem [shape: bf16[64,512], index: 7, kind: input, shape index: {}]   ;;  %s5637_s6 = inlined_call_operand.vmem [shape: f32[1,64], index: 6, kind: input, shape index: {}]   ;;  %s5638_s10 = inlined_call_operand.<no memory space> [shape: f32[1,1], index: 10, kind: input, shape index: {}]   ;;  %s5639_s8 = inlined_call_operand.vmem [shape: f32[1,512], index: 8, kind: input, shape index: {}]   ;;  %s5640_s9 = inlined_call_operand.vmem [shape: f32[1,512], index: 9, kind: input, shape index: {}]   ;;  %s5641_s11 = inlined_call_operand.vmem [shape: f32[8,128], index: 11, kind: output, shape index: {}]  }
   0x1   :  { %1040 = vmatprep.subr.bf16.mxu0 %v5642_v0  ;;  %v3854_v1 = vld [vmem:[%s5630_s1 + $0x38] sm:$0xff]   ;;  %3814 = vmatprep.subr.bf16.mxu1 %v5642_v0  ;;  %v3855_v2 = vld [vmem:[%s5630_s1 + $0x30] sm:$0xff]   ;;  %v3856_v3 = vld [vmem:[%s5630_s1 + $0x28] sm:$0xff]   ;;  %s4182_s27 = smov 96   ;;  %vm2141_vm3 = vcmask 785408   ;;  %vm4184_vm4 = vmmov 0  }
   0x2   :  { %3852 = vset.pattern.permute.xlu1 %v5642_v0  ;;  %3853 = vset.pattern.permute.xlu0 %v5642_v0  ;;  %v3857_v4 = vld [vmem:[%s5630_s1 + $0x20] sm:$0xff]   ;;  %v3858_v5 = vld [vmem:[%s5630_s1 + $0x18] sm:$0xff]   ;;  %v3859_v7 = vld [vmem:[%s5630_s1 + $0x10] sm:$0xff]  }
   0x3   :  { %1041 = vmatpush1.bf16.msra.mxu0 %v3854_v1  ;;  %3830 = vmatpush1.bf16.msra.mxu1 %v3854_v1  ;;  %v3872_v6 = vld [vmem:[%s5631_s0 + $0x4] ss:$8 sps:$4 sm:$0xff]   ;;  %v3862_v10 = vld [vmem:[%s5630_s1 + $0x78] sm:$0xff]   ;;  %v3863_v11 = vld [vmem:[%s5630_s1 + $0x70] sm:$0xff]  }
   0x4   :  { %1042 = vmatprep.subr.bf16.mxu0 %v5642_v0  ;;  %3815 = vmatprep.subr.bf16.mxu1 %v5642_v0  ;;  %v3860_v8 = vld [vmem:[%s5630_s1 + $0x8] sm:$0xff]   ;;  %v3861_v9 = vld [vmem:[%s5630_s1] sm:$0xff]   ;;  %v3866_v14 = vld [vmem:[%s5630_s1 + $0x58] sm:$0xff]  }
   0x5   :  { %1072 = vmatprep.mubr.bf16.mxu0 %v3872_v6  ;;  %v3864_v12 = vld [vmem:[%s5630_s1 + $0x68] sm:$0xff]   ;;  %v3865_v13 = vld [vmem:[%s5630_s1 + $0x60] sm:$0xff]   ;;  %v3867_v15 = vld [vmem:[%s5630_s1 + $0x50] sm:$0xff]  }
   0x6   :  { %v3868_v16 = vld [vmem:[%s5630_s1 + $0x48] sm:$0xff]   ;;  %v3920_v17 = vld [vmem:[%s5631_s0 + $0x2f4] ss:$8 sps:$4 sm:$0xff]   ;;  %v3869_v18 = vld [vmem:[%s5630_s1 + $0x40] sm:$0xff]  }
   0x7   :  { %1043 = vmatpush1.bf16.msra.mxu0 %v3855_v2  ;;  %3831 = vmatpush1.bf16.msra.mxu1 %v3855_v2  ;;  %v3870_v19 = vld [vmem:[%s5631_s0] ss:$8 sps:$4 sm:$0xff]   ;;  %v3918_v20 = vld [vmem:[%s5631_s0 + $0x2f0] ss:$8 sps:$4 sm:$0xff]   ;;  %v3873_v21 = vld [vmem:[%s5631_s0 + $0x14] ss:$8 sps:$4 sm:$0xff]  }
   0x8   :  { %1044 = vmatprep.subr.bf16.mxu0 %v5642_v0  ;;  %3816 = vmatprep.subr.bf16.mxu1 %v5642_v0  ;;  %v3924_v22 = vld [vmem:[%s5631_s0 + $0x304] ss:$8 sps:$4 sm:$0xff]   ;;  %v3875_v23 = vld [vmem:[%s5631_s0 + $0x10] ss:$8 sps:$4 sm:$0xff]   ;;  %v3928_v24 = vld [vmem:[%s5631_s0 + $0x300] ss:$8 sps:$4 sm:$0xff]  }
   0x9   :  { %1448 = vmatprep.mubr.bf16.mxu1 %v3920_v17  ;;  %v3876_v25 = vld [vmem:[%s5631_s0 + $0x24] ss:$8 sps:$4 sm:$0xff]   ;;  %v3930_v26 = vld [vmem:[%s5631_s0 + $0x314] ss:$8 sps:$4 sm:$0xff]   ;;  %v3878_v27 = vld [vmem:[%s5631_s0 + $0x20] ss:$8 sps:$4 sm:$0xff]  }
   0xa   :  { %v3934_v28 = vld [vmem:[%s5631_s0 + $0x310] ss:$8 sps:$4 sm:$0xff]   ;;  %v3879_v29 = vld [vmem:[%s5631_s0 + $0x34] ss:$8 sps:$4 sm:$0xff]   ;;  %v3936_v30 = vld [vmem:[%s5631_s0 + $0x324] ss:$8 sps:$4 sm:$0xff]  }
   0xb   :  { %1045 = vmatpush1.bf16.msra.mxu0 %v3856_v3  ;;  %3832 = vmatpush1.bf16.msra.mxu1 %v3856_v3  ;;  %v3881_v31 = vld [vmem:[%s5631_s0 + $0x30] ss:$8 sps:$4 sm:$0xff]   ;;  %v3940_v32 = vld [vmem:[%s5631_s0 + $0x320] ss:$8 sps:$4 sm:$0xff]   ;;  %v3882_v33 = vld [vmem:[%s5631_s0 + $0x44] ss:$8 sps:$4 sm:$0xff]  }
   0xc   :  { %1046 = vmatprep.subr.bf16.mxu0 %v5642_v0  ;;  %3817 = vmatprep.subr.bf16.mxu1 %v5642_v0  ;;  %v3942_v34 = vld [vmem:[%s5631_s0 + $0x334] ss:$8 sps:$4 sm:$0xff]   ;;  %v3884_v35 = vld [vmem:[%s5631_s0 + $0x40] ss:$8 sps:$4 sm:$0xff]   ;;  %v3946_v36 = vld [vmem:[%s5631_s0 + $0x330] ss:$8 sps:$4 sm:$0xff]  }
   0xd   :  { %v3885_v37 = vld [vmem:[%s5631_s0 + $0x54] ss:$8 sps:$4 sm:$0xff]   ;;  %v3948_v38 = vld [vmem:[%s5631_s0 + $0x344] ss:$8 sps:$4 sm:$0xff]   ;;  %v3887_v39 = vld [vmem:[%s5631_s0 + $0x50] ss:$8 sps:$4 sm:$0xff]  }
   0xe   :  { %v3952_v40 = vld [vmem:[%s5631_s0 + $0x340] ss:$8 sps:$4 sm:$0xff]   ;;  %v3888_v41 = vld [vmem:[%s5631_s0 + $0x64] ss:$8 sps:$4 sm:$0xff]   ;;  %v3954_v42 = vld [vmem:[%s5631_s0 + $0x354] ss:$8 sps:$4 sm:$0xff]  }
   0xf   :  { %1047 = vmatpush1.bf16.msra.mxu0 %v3857_v4  ;;  %3833 = vmatpush1.bf16.msra.mxu1 %v3857_v4  ;;  %v3890_v43 = vld [vmem:[%s5631_s0 + $0x60] ss:$8 sps:$4 sm:$0xff]   ;;  %v3958_v44 = vld [vmem:[%s5631_s0 + $0x350] ss:$8 sps:$4 sm:$0xff]   ;;  %v3891_v45 = vld [vmem:[%s5631_s0 + $0x74] ss:$8 sps:$4 sm:$0xff]  }
  0x10   :  { %1048 = vmatprep.subr.bf16.mxu0 %v5642_v0  ;;  %3818 = vmatprep.subr.bf16.mxu1 %v5642_v0  ;;  %v3960_v46 = vld [vmem:[%s5631_s0 + $0x364] ss:$8 sps:$4 sm:$0xff]   ;;  %v3893_v47 = vld [vmem:[%s5631_s0 + $0x70] ss:$8 sps:$4 sm:$0xff]   ;;  %v3964_v48 = vld [vmem:[%s5631_s0 + $0x360] ss:$8 sps:$4 sm:$0xff]  }
  0x11   :  { %v3894_v49 = vld [vmem:[%s5631_s0 + $0x84] ss:$8 sps:$4 sm:$0xff]   ;;  %v3966_v50 = vld [vmem:[%s5631_s0 + $0x374] ss:$8 sps:$4 sm:$0xff]   ;;  %v3896_v51 = vld [vmem:[%s5631_s0 + $0x80] ss:$8 sps:$4 sm:$0xff]  }
  0x12   :  { %v3970_v52 = vld [vmem:[%s5631_s0 + $0x370] ss:$8 sps:$4 sm:$0xff]   ;;  %v3897_v53 = vld [vmem:[%s5631_s0 + $0x94] ss:$8 sps:$4 sm:$0xff]   ;;  %v3972_v55 = vld [vmem:[%s5631_s0 + $0x384] ss:$8 sps:$4 sm:$0xff]  }
  0x13   :  { %1049 = vmatpush1.bf16.msra.mxu0 %v3858_v5  ;;  %3834 = vmatpush1.bf16.msra.mxu1 %v3858_v5  ;;  %v3899_v54 = vld [vmem:[%s5631_s0 + $0x90] ss:$8 sps:$4 sm:$0xff]   ;;  %v3900_v56 = vld [vmem:[%s5631_s0 + $0xa4] ss:$8 sps:$4 sm:$0xff]   ;;  %v3976_v57 = vld [vmem:[%s5631_s0 + $0x380] ss:$8 sps:$4 sm:$0xff]  }
  0x14   :  { %1050 = vmatprep.subr.bf16.mxu0 %v5642_v0  ;;  %3819 = vmatprep.subr.bf16.mxu1 %v5642_v0  ;;  %v3902_v58 = vld [vmem:[%s5631_s0 + $0xa0] ss:$8 sps:$4 sm:$0xff]   ;;  %v3978_v59 = vld [vmem:[%s5631_s0 + $0x394] ss:$8 sps:$4 sm:$0xff]   ;;  %v3982_v61 = vld [vmem:[%s5631_s0 + $0x390] ss:$8 sps:$4 sm:$0xff]  }
  0x15   :  { %v3903_v60 = vld [vmem:[%s5631_s0 + $0xb4] ss:$8 sps:$4 sm:$0xff]   ;;  %v3905_v62 = vld [vmem:[%s5631_s0 + $0xb0] ss:$8 sps:$4 sm:$0xff]   ;;  %v3984_v63 = vld [vmem:[%s5631_s0 + $0x3a4] ss:$8 sps:$4 sm:$0xff]  }
  0x16   :  { %v3906_v1 = vld [vmem:[%s5631_s0 + $0xc4] ss:$8 sps:$4 sm:$0xff]   ;;  %v3988_v2 = vld [vmem:[%s5631_s0 + $0x3a0] ss:$8 sps:$4 sm:$0xff]   ;;  %v3990_v4 = vld [vmem:[%s5631_s0 + $0x3b4] ss:$8 sps:$4 sm:$0xff]  }
  0x17   :  { %1051 = vmatpush1.bf16.msra.mxu0 %v3859_v7  ;;  %3835 = vmatpush1.bf16.msra.mxu1 %v3859_v7  ;;  %v3908_v3 = vld [vmem:[%s5631_s0 + $0xc0] ss:$8 sps:$4 sm:$0xff]   ;;  %v3909_v5 = vld [vmem:[%s5631_s0 + $0xd4] ss:$8 sps:$4 sm:$0xff]   ;;  %v3995_v6 = vld [vmem:[%s5631_s0 + $0x3b0] ss:$8 sps:$4 sm:$0xff]  }
  0x18   :  { %1052 = vmatprep.subr.bf16.mxu0 %v5642_v0  ;;  %3820 = vmatprep.subr.bf16.mxu1 %v5642_v0  ;;  %v3911_v7 = vld [vmem:[%s5631_s0 + $0xd0] ss:$8 sps:$4 sm:$0xff]   ;;  %v3921_v17 = vld [vmem:[%s5631_s0 + $0x104] ss:$8 sps:$4 sm:$0xff]  }
  0x1b   :  { %1053 = vmatpush1.bf16.msra.mxu0 %v3860_v8  ;;  %3836 = vmatpush1.bf16.msra.mxu1 %v3860_v8  ;;  %v3996_v8 = vld [vmem:[%s5631_s0 + $0x3c4] ss:$8 sps:$4 sm:$0xff]  }
  0x1c   :  { %1054 = vmatprep.subr.bf16.mxu0 %v5642_v0  ;;  %3821 = vmatprep.subr.bf16.mxu1 %v5642_v0 }
  0x1f   :  { %1055 = vmatpush1.bf16.msra.mxu0 %v3861_v9  ;;  %3837 = vmatpush1.bf16.msra.mxu1 %v3861_v9  ;;  %v3912_v9 = vld [vmem:[%s5631_s0 + $0xe4] ss:$8 sps:$4 sm:$0xff]  }
  0x20   :  { %1056 = vmatprep.subr.bf16.mxu0 %v5642_v0  ;;  %3822 = vmatprep.subr.bf16.mxu1 %v5642_v0 }
  0x23   :  { %1057 = vmatpush2.bf16.msra.mxu0 %v3862_v10  ;;  %3838 = vmatpush2.bf16.msra.mxu1 %v3862_v10  ;;  %v4001_v10 = vld [vmem:[%s5631_s0 + $0x3c0] ss:$8 sps:$4 sm:$0xff]  }
  0x24   :  { %1058 = vmatprep.subr.bf16.mxu0 %v5642_v0  ;;  %3823 = vmatprep.subr.bf16.mxu1 %v5642_v0 }
  0x27   :  { %1059 = vmatpush2.bf16.msra.mxu0 %v3863_v11  ;;  %3839 = vmatpush2.bf16.msra.mxu1 %v3863_v11  ;;  %v3914_v11 = vld [vmem:[%s5631_s0 + $0xe0] ss:$8 sps:$4 sm:$0xff]  }
  0x28   :  { %1060 = vmatprep.subr.bf16.mxu0 %v5642_v0  ;;  %3824 = vmatprep.subr.bf16.mxu1 %v5642_v0 }
  0x2b   :  { %1061 = vmatpush2.bf16.msra.mxu0 %v3864_v12  ;;  %3840 = vmatpush2.bf16.msra.mxu1 %v3864_v12  ;;  %v4002_v12 = vld [vmem:[%s5631_s0 + $0x3d4] ss:$8 sps:$4 sm:$0xff]  }
  0x2c   :  { %1062 = vmatprep.subr.bf16.mxu0 %v5642_v0  ;;  %3825 = vmatprep.subr.bf16.mxu1 %v5642_v0 }
  0x2f   :  { %1063 = vmatpush2.bf16.msra.mxu0 %v3865_v13  ;;  %3841 = vmatpush2.bf16.msra.mxu1 %v3865_v13  ;;  %v3915_v13 = vld [vmem:[%s5631_s0 + $0xf4] ss:$8 sps:$4 sm:$0xff]  }
  0x30   :  { %1064 = vmatprep.subr.bf16.mxu0 %v5642_v0  ;;  %3826 = vmatprep.subr.bf16.mxu1 %v5642_v0 }
  0x33   :  { %1065 = vmatpush2.bf16.msra.mxu0 %v3866_v14  ;;  %3842 = vmatpush2.bf16.msra.mxu1 %v3866_v14  ;;  %v4007_v14 = vld [vmem:[%s5631_s0 + $0x3d0] ss:$8 sps:$4 sm:$0xff]  }
  0x34   :  { %1066 = vmatprep.subr.bf16.mxu0 %v5642_v0  ;;  %3827 = vmatprep.subr.bf16.mxu1 %v5642_v0 }
  0x37   :  { %1067 = vmatpush2.bf16.msra.mxu0 %v3867_v15  ;;  %3843 = vmatpush2.bf16.msra.mxu1 %v3867_v15  ;;  %v3917_v15 = vld [vmem:[%s5631_s0 + $0xf0] ss:$8 sps:$4 sm:$0xff]  }
  0x38   :  { %1068 = vmatprep.subr.bf16.mxu0 %v5642_v0  ;;  %3828 = vmatprep.subr.bf16.mxu1 %v5642_v0 }
  0x3b   :  { %1069 = vmatpush2.bf16.msra.mxu0 %v3868_v16  ;;  %3844 = vmatpush2.bf16.msra.mxu1 %v3868_v16  ;;  %v4008_v16 = vld [vmem:[%s5631_s0 + $0x3e4] ss:$8 sps:$4 sm:$0xff]  }
  0x3c   :  { %1070 = vmatprep.subr.bf16.mxu0 %v5642_v0  ;;  %3829 = vmatprep.subr.bf16.mxu1 %v5642_v0 }
  0x3f   :  { %1071 = vmatpush2.bf16.msra.mxu0 %v3869_v18  ;;  %3845 = vmatpush2.bf16.msra.mxu1 %v3869_v18  ;;  %v4013_v18 = vld [vmem:[%s5631_s0 + $0x3e0] ss:$8 sps:$4 sm:$0xff]  }
  0x42   :  { %1073 = vmatmul.mubr.bf16.vlgmr.msra.gmra.mxu0 %v3870_v19  ;;  %1449 = vmatmul.mubr.bf16.vlgmr.msra.gmra.mxu1 %v3918_v20  ;;  %v3923_v19 = vld [vmem:[%s5631_s0 + $0x100] ss:$8 sps:$4 sm:$0xff]   ;;  %v4014_v20 = vld [vmem:[%s5631_s0 + $0x3f4] ss:$8 sps:$4 sm:$0xff]  }
  0x43   :  { %1080 = vmatprep.mubr.bf16.mxu0 %v3873_v21  ;;  %1456 = vmatprep.mubr.bf16.mxu1 %v3924_v22  ;;  %v3926_v21 = vld [vmem:[%s5631_s0 + $0x114] ss:$8 sps:$4 sm:$0xff]   ;;  %v4019_v22 = vld [vmem:[%s5631_s0 + $0x3f0] ss:$8 sps:$4 sm:$0xff]  }
  0x4a   :  { %1081 = vmatmul.mubr.bf16.gmra.mxu0 %v3875_v23  ;;  %1457 = vmatmul.mubr.bf16.gmra.mxu1 %v3928_v24  ;;  %v3929_v23 = vld [vmem:[%s5631_s0 + $0x110] ss:$8 sps:$4 sm:$0xff]   ;;  %v4020_v24 = vld [vmem:[%s5631_s0 + $0x404] ss:$8 sps:$4 sm:$0xff]  }
  0x4b   :  { %1088 = vmatprep.mubr.bf16.mxu0 %v3876_v25  ;;  %1464 = vmatprep.mubr.bf16.mxu1 %v3930_v26  ;;  %v3932_v25 = vld [vmem:[%s5631_s0 + $0x124] ss:$8 sps:$4 sm:$0xff]   ;;  %v4025_v26 = vld [vmem:[%s5631_s0 + $0x400] ss:$8 sps:$4 sm:$0xff]  }
  0x52   :  { %1089 = vmatmul.mubr.bf16.gmra.mxu0 %v3878_v27  ;;  %1465 = vmatmul.mubr.bf16.gmra.mxu1 %v3934_v28  ;;  %v3935_v27 = vld [vmem:[%s5631_s0 + $0x120] ss:$8 sps:$4 sm:$0xff]   ;;  %v4026_v28 = vld [vmem:[%s5631_s0 + $0x414] ss:$8 sps:$4 sm:$0xff]  }
  0x53   :  { %1096 = vmatprep.mubr.bf16.mxu0 %v3879_v29  ;;  %1472 = vmatprep.mubr.bf16.mxu1 %v3936_v30  ;;  %v3938_v29 = vld [vmem:[%s5631_s0 + $0x134] ss:$8 sps:$4 sm:$0xff]   ;;  %v4031_v30 = vld [vmem:[%s5631_s0 + $0x410] ss:$8 sps:$4 sm:$0xff]  }
  0x5a   :  { %1097 = vmatmul.mubr.bf16.gmra.mxu0 %v3881_v31  ;;  %1473 = vmatmul.mubr.bf16.gmra.mxu1 %v3940_v32  ;;  %v3941_v31 = vld [vmem:[%s5631_s0 + $0x130] ss:$8 sps:$4 sm:$0xff]   ;;  %v4032_v32 = vld [vmem:[%s5631_s0 + $0x424] ss:$8 sps:$4 sm:$0xff]  }
  0x5b   :  { %1104 = vmatprep.mubr.bf16.mxu0 %v3882_v33  ;;  %1480 = vmatprep.mubr.bf16.mxu1 %v3942_v34  ;;  %v3944_v33 = vld [vmem:[%s5631_s0 + $0x144] ss:$8 sps:$4 sm:$0xff]   ;;  %v4037_v34 = vld [vmem:[%s5631_s0 + $0x420] ss:$8 sps:$4 sm:$0xff]  }
  0x62   :  { %1105 = vmatmul.mubr.bf16.gmra.mxu0 %v3884_v35  ;;  %1481 = vmatmul.mubr.bf16.gmra.mxu1 %v3946_v36  ;;  %v3947_v35 = vld [vmem:[%s5631_s0 + $0x140] ss:$8 sps:$4 sm:$0xff]   ;;  %v4038_v36 = vld [vmem:[%s5631_s0 + $0x434] ss:$8 sps:$4 sm:$0xff]  }
  0x63   :  { %1112 = vmatprep.mubr.bf16.mxu0 %v3885_v37  ;;  %1488 = vmatprep.mubr.bf16.mxu1 %v3948_v38  ;;  %v3950_v37 = vld [vmem:[%s5631_s0 + $0x154] ss:$8 sps:$4 sm:$0xff]   ;;  %v4043_v38 = vld [vmem:[%s5631_s0 + $0x430] ss:$8 sps:$4 sm:$0xff]  }
  0x6a   :  { %1113 = vmatmul.mubr.bf16.gmra.mxu0 %v3887_v39  ;;  %1489 = vmatmul.mubr.bf16.gmra.mxu1 %v3952_v40  ;;  %v3953_v39 = vld [vmem:[%s5631_s0 + $0x150] ss:$8 sps:$4 sm:$0xff]   ;;  %v4044_v40 = vld [vmem:[%s5631_s0 + $0x444] ss:$8 sps:$4 sm:$0xff]  }
  0x6b   :  { %1120 = vmatprep.mubr.bf16.mxu0 %v3888_v41  ;;  %1496 = vmatprep.mubr.bf16.mxu1 %v3954_v42  ;;  %v3956_v41 = vld [vmem:[%s5631_s0 + $0x164] ss:$8 sps:$4 sm:$0xff]   ;;  %v4049_v42 = vld [vmem:[%s5631_s0 + $0x440] ss:$8 sps:$4 sm:$0xff]  }
  0x72   :  { %1121 = vmatmul.mubr.bf16.gmra.mxu0 %v3890_v43  ;;  %1497 = vmatmul.mubr.bf16.gmra.mxu1 %v3958_v44  ;;  %v3959_v43 = vld [vmem:[%s5631_s0 + $0x160] ss:$8 sps:$4 sm:$0xff]   ;;  %v3962_v44 = vld [vmem:[%s5631_s0 + $0x174] ss:$8 sps:$4 sm:$0xff]  }
  0x73   :  { %1128 = vmatprep.mubr.bf16.mxu0 %v3891_v45  ;;  %1504 = vmatprep.mubr.bf16.mxu1 %v3960_v46  ;;  %v4053_v45 = vld [vmem:[%s5631_s0 + $0x454] ss:$8 sps:$4 sm:$0xff]   ;;  %v4055_v46 = vld [vmem:[%s5631_s0 + $0x450] ss:$8 sps:$4 sm:$0xff]  }
  0x7a   :  { %1129 = vmatmul.mubr.bf16.gmra.mxu0 %v3893_v47  ;;  %1505 = vmatmul.mubr.bf16.gmra.mxu1 %v3964_v48  ;;  %v3965_v47 = vld [vmem:[%s5631_s0 + $0x170] ss:$8 sps:$4 sm:$0xff]   ;;  %v3968_v48 = vld [vmem:[%s5631_s0 + $0x184] ss:$8 sps:$4 sm:$0xff]  }
  0x7b   :  { %1136 = vmatprep.mubr.bf16.mxu0 %v3894_v49  ;;  %1512 = vmatprep.mubr.bf16.mxu1 %v3966_v50  ;;  %v3971_v49 = vld [vmem:[%s5631_s0 + $0x180] ss:$8 sps:$4 sm:$0xff]   ;;  %v4059_v50 = vld [vmem:[%s5631_s0 + $0x464] ss:$8 sps:$4 sm:$0xff]  }
  0x82   :  { %1137 = vmatmul.mubr.bf16.gmra.mxu0 %v3896_v51  ;;  %1513 = vmatmul.mubr.bf16.gmra.mxu1 %v3970_v52  ;;  %v3974_v51 = vld [vmem:[%s5631_s0 + $0x194] ss:$8 sps:$4 sm:$0xff]   ;;  %v4064_v52 = vld [vmem:[%s5631_s0 + $0x460] ss:$8 sps:$4 sm:$0xff]  }
  0x83   :  { %1144 = vmatprep.mubr.bf16.mxu0 %v3897_v53  ;;  %1520 = vmatprep.mubr.bf16.mxu1 %v3972_v55  ;;  %v4627_v53 = vld [vmem:[%s5632_s2] ss:$0 sm:$0xff] }
  0x8a   :  { %1145 = vmatmul.mubr.bf16.gmra.mxu0 %v3899_v54  ;;  %1521 = vmatmul.mubr.bf16.gmra.mxu1 %v3976_v57 }
  0x8b   :  { %1152 = vmatprep.mubr.bf16.mxu0 %v3900_v56  ;;  %1528 = vmatprep.mubr.bf16.mxu1 %v3978_v59 }
  0x92   :  { %1153 = vmatmul.mubr.bf16.gmra.mxu0 %v3902_v58  ;;  %1529 = vmatmul.mubr.bf16.gmra.mxu1 %v3982_v61  ;;  %v3977_v61 = vld [vmem:[%s5631_s0 + $0x190] ss:$8 sps:$4 sm:$0xff]  }
  0x93   :  { %1160 = vmatprep.mubr.bf16.mxu0 %v3903_v60  ;;  %1536 = vmatprep.mubr.bf16.mxu1 %v3984_v63 }
  0x9a   :  { %1161 = vmatmul.mubr.bf16.gmra.mxu0 %v3905_v62  ;;  %1537 = vmatmul.mubr.bf16.gmra.mxu1 %v3988_v2 }
  0x9b   :  { %1168 = vmatprep.mubr.bf16.mxu0 %v3906_v1  ;;  %1544 = vmatprep.mubr.bf16.mxu1 %v3990_v4  ;;  %v3980_v1 = vld [vmem:[%s5631_s0 + $0x1a4] ss:$8 sps:$4 sm:$0xff]  }
  0xa2   :  { %1169 = vmatmul.mubr.bf16.gmra.mxu0 %v3908_v3  ;;  %1545 = vmatmul.mubr.bf16.gmra.mxu1 %v3995_v6 }
  0xa3   :  { %1176 = vmatprep.mubr.bf16.mxu0 %v3909_v5  ;;  %1552 = vmatprep.mubr.bf16.mxu1 %v3996_v8 }
  0xaa   :  { %1177 = vmatmul.mubr.bf16.gmra.mxu0 %v3911_v7  ;;  %1553 = vmatmul.mubr.bf16.gmra.mxu1 %v4001_v10 }
  0xab   :  { %1184 = vmatprep.mubr.bf16.mxu0 %v3912_v9  ;;  %1560 = vmatprep.mubr.bf16.mxu1 %v4002_v12 }
  0xb2   :  { %1185 = vmatmul.mubr.bf16.gmra.mxu0 %v3914_v11  ;;  %1561 = vmatmul.mubr.bf16.gmra.mxu1 %v4007_v14  ;;  %v4068_v11 = vld [vmem:[%s5631_s0 + $0x474] ss:$8 sps:$4 sm:$0xff]   ;;  %v4070_v14 = vld [vmem:[%s5631_s0 + $0x470] ss:$8 sps:$4 sm:$0xff]  }
  0xb3   :  { %1192 = vmatprep.mubr.bf16.mxu0 %v3915_v13  ;;  %1568 = vmatprep.mubr.bf16.mxu1 %v4008_v16 }
  0xba   :  { %1193 = vmatmul.mubr.bf16.gmra.mxu0 %v3917_v15  ;;  %1569 = vmatmul.mubr.bf16.gmra.mxu1 %v4013_v18 }
  0xbb   :  { %1200 = vmatprep.mubr.bf16.mxu0 %v3921_v17  ;;  %1576 = vmatprep.mubr.bf16.mxu1 %v4014_v20  ;;  %v3983_v20 = vld [vmem:[%s5631_s0 + $0x1a0] ss:$8 sps:$4 sm:$0xff]  }
  0xc2   :  { %1201 = vmatmul.mubr.bf16.gmra.mxu0 %v3923_v19  ;;  %1577 = vmatmul.mubr.bf16.gmra.mxu1 %v4019_v22 }
  0xc3   :  { %1208 = vmatprep.mubr.bf16.mxu0 %v3926_v21  ;;  %1584 = vmatprep.mubr.bf16.mxu1 %v4020_v24 }
  0xca   :  { %1209 = vmatmul.mubr.bf16.gmra.mxu0 %v3929_v23  ;;  %1585 = vmatmul.mubr.bf16.gmra.mxu1 %v4025_v26  ;;  %v3986_v23 = vld [vmem:[%s5631_s0 + $0x1b4] ss:$8 sps:$4 sm:$0xff]  }
  0xcb   :  { %1216 = vmatprep.mubr.bf16.mxu0 %v3932_v25  ;;  %1592 = vmatprep.mubr.bf16.mxu1 %v4026_v28 }
  0xd2   :  { %1217 = vmatmul.mubr.bf16.gmra.mxu0 %v3935_v27  ;;  %1593 = vmatmul.mubr.bf16.gmra.mxu1 %v4031_v30 }
  0xd3   :  { %1224 = vmatprep.mubr.bf16.mxu0 %v3938_v29  ;;  %1600 = vmatprep.mubr.bf16.mxu1 %v4032_v32 }
  0xda   :  { %1225 = vmatmul.mubr.bf16.gmra.mxu0 %v3941_v31  ;;  %1601 = vmatmul.mubr.bf16.gmra.mxu1 %v4037_v34 }
  0xdb   :  { %1232 = vmatprep.mubr.bf16.mxu0 %v3944_v33  ;;  %1608 = vmatprep.mubr.bf16.mxu1 %v4038_v36 }
  0xe2   :  { %1233 = vmatmul.mubr.bf16.gmra.mxu0 %v3947_v35  ;;  %1609 = vmatmul.mubr.bf16.gmra.mxu1 %v4043_v38 }
  0xe3   :  { %1240 = vmatprep.mubr.bf16.mxu0 %v3950_v37  ;;  %1616 = vmatprep.mubr.bf16.mxu1 %v4044_v40  ;;  %v3989_v40 = vld [vmem:[%s5631_s0 + $0x1b0] ss:$8 sps:$4 sm:$0xff]  }
  0xea   :  { %1241 = vmatmul.mubr.bf16.gmra.mxu0 %v3953_v39  ;;  %1617 = vmatmul.mubr.bf16.gmra.mxu1 %v4049_v42 }
  0xeb   :  { %1248 = vmatprep.mubr.bf16.mxu0 %v3956_v41  ;;  %1624 = vmatprep.mubr.bf16.mxu1 %v4053_v45 }
  0xf2   :  { %1249 = vmatmul.mubr.bf16.gmra.mxu0 %v3959_v43  ;;  %1625 = vmatmul.mubr.bf16.gmra.mxu1 %v4055_v46  ;;  %v3994_v43 = vld [vmem:[%s5631_s0 + $0x1c4] ss:$8 sps:$4 sm:$0xff]  }
  0xf3   :  { %1256 = vmatprep.mubr.bf16.mxu0 %v3962_v44  ;;  %1632 = vmatprep.mubr.bf16.mxu1 %v4059_v50 }
  0xfa   :  { %1257 = vmatmul.mubr.bf16.gmra.mxu0 %v3965_v47  ;;  %1633 = vmatmul.mubr.bf16.gmra.mxu1 %v4064_v52 }
  0xfb   :  { %1264 = vmatprep.mubr.bf16.mxu0 %v3968_v48  ;;  %1640 = vmatprep.mubr.bf16.mxu1 %v4068_v11 }
 0x102   :  { %v1074_v54 = vpop.f32.mrf.mxu0  ;;  %1265 = vmatmul.mubr.bf16.gmra.mxu0 %v3971_v49  ;;  %v1450_v55 = vpop.f32.mrf.mxu1  ;;  %1641 = vmatmul.mubr.bf16.gmra.mxu1 %v4070_v14 }
 0x103   :  { %1272 = vmatprep.mubr.bf16.mxu0 %v3974_v51  ;;  %v1075_v58 = vadd.f32 %v4627_v53, %v1074_v54  ;;  %v1451_v59 = vadd.f32 %v4627_v53, %v1450_v55 }
 0x104   :  { %v1076_v56 = vpop.f32.mrf.mxu0  ;;  %v1452_v57 = vpop.f32.mrf.mxu1 }
 0x105   :  { %v1743_v2 = vmax.f32 %v1451_v59, 0.0  ;;  %v1649_v6 = vmax.f32 %v1075_v58, 0.0 }
 0x106   :  { %v1077_v60 = vpop.f32.mrf.mxu0  ;;  %v1453_v62 = vpop.f32.mrf.mxu1 }
 0x107   :  { %v1078_v63 = vadd.f32 %v4627_v53, %v1077_v60  ;;  %v1454_v3 = vadd.f32 %v4627_v53, %v1453_v62 }
 0x108   :  { %v1079_v4 = vpop.f32.mrf.mxu0  ;;  %v1455_v5 = vpop.f32.mrf.mxu1 }
 0x109   :  { %v1650_v7 = vmax.f32 %v1078_v63, 0.0  ;;  %v1744_v8 = vmax.f32 %v1454_v3, 0.0 }
 0x10a   :  { %v1082_v9 = vpop.f32.mrf.mxu0  ;;  %1273 = vmatmul.mubr.bf16.gmra.mxu0 %v3977_v61  ;;  %v1458_v10 = vpop.f32.mrf.mxu1  ;;  %v3992_v61 = vld [vmem:[%s5631_s0 + $0x1c0] ss:$8 sps:$4 sm:$0xff]  }
 0x10b   :  { %v4642_v12 = vpack.c.bf16 %v1650_v7, %v1649_v6  ;;  %1280 = vmatprep.mubr.bf16.mxu0 %v3980_v1  ;;  %v4644_v13 = vpack.c.bf16 %v1744_v8, %v1743_v2  ;;  %v1083_v17 = vadd.f32 %v4627_v53, %v1082_v9  ;;  %v1459_v18 = vadd.f32 %v4627_v53, %v1458_v10  ;;  %v4000_v1 = vld [vmem:[%s5631_s0 + $0x1d4] ss:$8 sps:$4 sm:$0xff]  }
 0x10c   :  { %v1084_v15 = vpop.f32.mrf.mxu0  ;;  %v1460_v16 = vpop.f32.mrf.mxu1 }
 0x10d   :  { %v1745_v24 = vmax.f32 %v1459_v18, 0.0  ;;  %v1651_v28 = vmax.f32 %v1083_v17, 0.0 }
 0x10e   :  { %v1085_v19 = vpop.f32.mrf.mxu0  ;;  %v1461_v21 = vpop.f32.mrf.mxu1 }
 0x10f   :  { %v1086_v22 = vadd.f32 %v4627_v53, %v1085_v19  ;;  %v1462_v25 = vadd.f32 %v4627_v53, %v1461_v21  ;;  %v3998_v19 = vld [vmem:[%s5631_s0 + $0x1d0] ss:$8 sps:$4 sm:$0xff]   ;;  %v4006_v21 = vld [vmem:[%s5631_s0 + $0x1e4] ss:$8 sps:$4 sm:$0xff]  }
 0x110   :  { %v1087_v26 = vpop.f32.mrf.mxu0  ;;  %v1463_v27 = vpop.f32.mrf.mxu1 }
 0x111   :  { %v1652_v29 = vmax.f32 %v1086_v22, 0.0  ;;  %v1746_v30 = vmax.f32 %v1462_v25, 0.0 }
 0x112   :  { %v1090_v31 = vpop.f32.mrf.mxu0  ;;  %1281 = vmatmul.mubr.bf16.gmra.mxu0 %v3983_v20  ;;  %v1466_v32 = vpop.f32.mrf.mxu1 }
 0x113   :  { %v4659_v33 = vpack.c.bf16 %v1652_v29, %v1651_v28  ;;  %1288 = vmatprep.mubr.bf16.mxu0 %v3986_v23  ;;  %v4661_v34 = vpack.c.bf16 %v1746_v30, %v1745_v24  ;;  %v1091_v37 = vadd.f32 %v4627_v53, %v1090_v31  ;;  %v1467_v38 = vadd.f32 %v4627_v53, %v1466_v32 }
 0x114   :  { %v1092_v35 = vpop.f32.mrf.mxu0  ;;  %v1468_v36 = vpop.f32.mrf.mxu1 }
 0x115   :  { %v1747_v44 = vmax.f32 %v1467_v38, 0.0  ;;  %v1653_v48 = vmax.f32 %v1091_v37, 0.0 }
 0x116   :  { %v1093_v39 = vpop.f32.mrf.mxu0  ;;  %v1469_v41 = vpop.f32.mrf.mxu1 }
 0x117   :  { %v1094_v42 = vadd.f32 %v4627_v53, %v1093_v39  ;;  %v1470_v45 = vadd.f32 %v4627_v53, %v1469_v41 }
 0x118   :  { %v1095_v46 = vpop.f32.mrf.mxu0  ;;  %v1471_v47 = vpop.f32.mrf.mxu1 }
 0x119   :  { %v1654_v49 = vmax.f32 %v1094_v42, 0.0  ;;  %v1748_v50 = vmax.f32 %v1470_v45, 0.0 }
 0x11a   :  { %v1098_v51 = vpop.f32.mrf.mxu0  ;;  %1289 = vmatmul.mubr.bf16.gmra.mxu0 %v3989_v40  ;;  %v1474_v52 = vpop.f32.mrf.mxu1  ;;  %v4004_v40 = vld [vmem:[%s5631_s0 + $0x1e0] ss:$8 sps:$4 sm:$0xff]  }
 0x11b   :  { %v4673_v54 = vpack.c.bf16 %v1654_v49, %v1653_v48  ;;  %1296 = vmatprep.mubr.bf16.mxu0 %v3994_v43  ;;  %v4675_v55 = vpack.c.bf16 %v1748_v50, %v1747_v44  ;;  %v1475_v56 = vadd.f32 %v4627_v53, %v1474_v52  ;;  %v1099_v59 = vadd.f32 %v4627_v53, %v1098_v51  ;;  %v4012_v44 = vld [vmem:[%s5631_s0 + $0x1f4] ss:$8 sps:$4 sm:$0xff]  }
 0x11c   :  { %v1100_v57 = vpop.f32.mrf.mxu0  ;;  %v1476_v58 = vpop.f32.mrf.mxu1 }
 0x11d   :  { %v1749_v2 = vmax.f32 %v1475_v56, 0.0  ;;  %v1655_v6 = vmax.f32 %v1099_v59, 0.0 }
 0x11e   :  { %v1101_v60 = vpop.f32.mrf.mxu0  ;;  %v1477_v62 = vpop.f32.mrf.mxu1 }
 0x11f   :  { %v1102_v63 = vadd.f32 %v4627_v53, %v1101_v60  ;;  %v1478_v3 = vadd.f32 %v4627_v53, %v1477_v62 }
 0x120   :  { %v1103_v4 = vpop.f32.mrf.mxu0  ;;  %v1479_v5 = vpop.f32.mrf.mxu1 }
 0x121   :  { %v1656_v7 = vmax.f32 %v1102_v63, 0.0  ;;  %v1750_v8 = vmax.f32 %v1478_v3, 0.0  ;;  %v4010_v4 = vld [vmem:[%s5631_s0 + $0x1f0] ss:$8 sps:$4 sm:$0xff]  }
 0x122   :  { %v1106_v9 = vpop.f32.mrf.mxu0  ;;  %1297 = vmatmul.mubr.bf16.gmra.mxu0 %v3992_v61  ;;  %v1482_v10 = vpop.f32.mrf.mxu1 }
 0x123   :  { %v4687_v11 = vpack.c.bf16 %v1656_v7, %v1655_v6  ;;  %1304 = vmatprep.mubr.bf16.mxu0 %v4000_v1  ;;  %v4689_v14 = vpack.c.bf16 %v1750_v8, %v1749_v2  ;;  %v1483_v15 = vadd.f32 %v4627_v53, %v1482_v10  ;;  %v1107_v30 = vadd.f32 %v4627_v53, %v1106_v9  ;;  %v4018_v8 = vld [vmem:[%s5631_s0 + $0x204] ss:$8 sps:$4 sm:$0xff]  }
 0x124   :  { %v1108_v16 = vpop.f32.mrf.mxu0  ;;  %v1484_v17 = vpop.f32.mrf.mxu1 }
 0x125   :  { %v1751_v22 = vmax.f32 %v1483_v15, 0.0  ;;  %v1657_v42 = vmax.f32 %v1107_v30, 0.0  ;;  %v4016_v30 = vld [vmem:[%s5631_s0 + $0x200] ss:$8 sps:$4 sm:$0xff]  }
 0x126   :  { %v1109_v18 = vpop.f32.mrf.mxu0  ;;  %v1485_v20 = vpop.f32.mrf.mxu1 }
 0x127   :  { %v1486_v23 = vadd.f32 %v4627_v53, %v1485_v20  ;;  %v1110_v26 = vadd.f32 %v4627_v53, %v1109_v18 }
 0x128   :  { %v1111_v24 = vpop.f32.mrf.mxu0  ;;  %v1487_v25 = vpop.f32.mrf.mxu1 }
 0x129   :  { %v1752_v27 = vmax.f32 %v1486_v23, 0.0  ;;  %v1658_v37 = vmax.f32 %v1110_v26, 0.0 }
 0x12a   :  { %v1114_v28 = vpop.f32.mrf.mxu0  ;;  %1305 = vmatmul.mubr.bf16.gmra.mxu0 %v3998_v19  ;;  %v1490_v29 = vpop.f32.mrf.mxu1 }
 0x12b   :  { %1312 = vmatprep.mubr.bf16.mxu0 %v4006_v21  ;;  %v4701_v31 = vpack.c.bf16 %v1752_v27, %v1751_v22  ;;  %v1491_v32 = vadd.f32 %v4627_v53, %v1490_v29  ;;  %v1115_v38 = vadd.f32 %v4627_v53, %v1114_v28  ;;  %v4713_v49 = vpack.c.bf16 %v1658_v37, %v1657_v42  ;;  %v4024_v37 = vld [vmem:[%s5631_s0 + $0x214] ss:$8 sps:$4 sm:$0xff]  }
 0x12c   :  { %v1116_v35 = vpop.f32.mrf.mxu0  ;;  %v1492_v36 = vpop.f32.mrf.mxu1 }
 0x12d   :  { %v1753_v45 = vmax.f32 %v1491_v32, 0.0  ;;  %v1659_v50 = vmax.f32 %v1115_v38, 0.0  ;;  %v1871_v2 = vrot.slane %v4713_v49, 4 }
 0x12e   :  { %v1117_v39 = vpop.f32.mrf.mxu0  ;;  %v1493_v41 = vpop.f32.mrf.mxu1 }
 0x12f   :  { %v1118_v43 = vadd.f32 %v4627_v53, %v1117_v39  ;;  %v1494_v46 = vadd.f32 %v4627_v53, %v1493_v41 }
 0x130   :  { %v1119_v47 = vpop.f32.mrf.mxu0  ;;  %v1495_v48 = vpop.f32.mrf.mxu1 }
 0x131   :  { %v1660_v51 = vmax.f32 %v1118_v43, 0.0  ;;  %v1754_v52 = vmax.f32 %v1494_v46, 0.0 }
 0x132   :  { %v1122_v56 = vpop.f32.mrf.mxu0  ;;  %1313 = vmatmul.mubr.bf16.gmra.mxu0 %v4004_v40  ;;  %v1498_v57 = vpop.f32.mrf.mxu1 }
 0x133   :  { %v1798_v58 = vpack.c.bf16 %v1660_v51, %v1659_v50  ;;  %1320 = vmatprep.mubr.bf16.mxu0 %v4012_v44  ;;  %v4715_v59 = vpack.c.bf16 %v1754_v52, %v1753_v45  ;;  %v1499_v60 = vadd.f32 %v4627_v53, %v1498_v57  ;;  %v1123_v1 = vadd.f32 %v4627_v53, %v1122_v56 }
 0x134   :  { %v1124_v61 = vpop.f32.mrf.mxu0  ;;  %v1500_v62 = vpop.f32.mrf.mxu1 }
 0x135   :  { %v1872_v63 = vrot.slane %v1798_v58, 4  ;;  %v1755_v9 = vmax.f32 %v1499_v60, 0.0  ;;  %v1661_v17 = vmax.f32 %v1123_v1, 0.0  ;;  %v4022_v60 = vld [vmem:[%s5631_s0 + $0x210] ss:$8 sps:$4 sm:$0xff]  }
 0x136   :  { %v1125_v3 = vpop.f32.mrf.mxu0  ;;  %v1501_v5 = vpop.f32.mrf.mxu1  ;;  %v4030_v1 = vld [vmem:[%s5631_s0 + $0x224] ss:$8 sps:$4 sm:$0xff]  }
 0x137   :  { %v1126_v6 = vadd.f32 %v4627_v53, %v1125_v3  ;;  %v1873_v7 = vsel %vm1870_vm0, %v1871_v2, %v1872_v63  ;;  %v1502_v10 = vadd.f32 %v4627_v53, %v1501_v5 }
 0x138   :  { %v1127_v15 = vpop.f32.mrf.mxu0  ;;  %1880 = vrot.lane.b32.xlu0 %v1873_v7, %s4180_s22  ;;  %v1503_v16 = vpop.f32.mrf.mxu1 }
 0x139   :  { %v1662_v18 = vmax.f32 %v1126_v6, 0.0  ;;  %v1756_v19 = vmax.f32 %v1502_v10, 0.0 }
 0x13a   :  { %v1130_v20 = vpop.f32.mrf.mxu0  ;;  %1321 = vmatmul.mubr.bf16.gmra.mxu0 %v4010_v4  ;;  %v1506_v21 = vpop.f32.mrf.mxu1 }
 0x13b   :  { %v1799_v22 = vpack.c.bf16 %v1662_v18, %v1661_v17  ;;  %1328 = vmatprep.mubr.bf16.mxu0 %v4018_v8  ;;  %v4730_v23 = vpack.c.bf16 %v1756_v19, %v1755_v9  ;;  %v1131_v27 = vadd.f32 %v4627_v53, %v1130_v20  ;;  %v1507_v28 = vadd.f32 %v4627_v53, %v1506_v21 }
 0x13c   :  { %v1132_v24 = vpop.f32.mrf.mxu0  ;;  %v1508_v25 = vpop.f32.mrf.mxu1 }
 0x13d   :  { %v1874_v26 = vrot.slane %v1799_v22, 4  ;;  %v1757_v38 = vmax.f32 %v1507_v28, 0.0  ;;  %v1663_v42 = vmax.f32 %v1131_v27, 0.0  ;;  %v4028_v24 = vld [vmem:[%s5631_s0 + $0x220] ss:$8 sps:$4 sm:$0xff]  }
 0x13e   :  { %v1133_v29 = vpop.f32.mrf.mxu0  ;;  %v1509_v32 = vpop.f32.mrf.mxu1  ;;  %v4036_v27 = vld [vmem:[%s5631_s0 + $0x234] ss:$8 sps:$4 sm:$0xff]  }
 0x13f   :  { %v1134_v35 = vadd.f32 %v4627_v53, %v1133_v29  ;;  %v1875_v36 = vsel %vm1870_vm0, %v1872_v63, %v1874_v26  ;;  %v1510_v39 = vadd.f32 %v4627_v53, %v1509_v32 }
 0x140   :  { %v1135_v40 = vpop.f32.mrf.mxu0  ;;  %1882 = vrot.lane.b32.xlu1 %v1875_v36, %s4180_s22  ;;  %v1511_v41 = vpop.f32.mrf.mxu1 }
 0x141   :  { %v1664_v43 = vmax.f32 %v1134_v35, 0.0  ;;  %v1758_v44 = vmax.f32 %v1510_v39, 0.0 }
 0x142   :  { %v1138_v45 = vpop.f32.mrf.mxu0  ;;  %1329 = vmatmul.mubr.bf16.gmra.mxu0 %v4016_v30  ;;  %v1514_v46 = vpop.f32.mrf.mxu1 }
 0x143   :  { %v1800_v47 = vpack.c.bf16 %v1664_v43, %v1663_v42  ;;  %1336 = vmatprep.mubr.bf16.mxu0 %v4024_v37  ;;  %v4744_v48 = vpack.c.bf16 %v1758_v44, %v1757_v38  ;;  %v1139_v56 = vadd.f32 %v4627_v53, %v1138_v45  ;;  %v1515_v57 = vadd.f32 %v4627_v53, %v1514_v46 }
 0x144   :  { %v1140_v50 = vpop.f32.mrf.mxu0  ;;  %v1516_v51 = vpop.f32.mrf.mxu1 }
 0x145   :  { %v1876_v52 = vrot.slane %v1800_v47, 4  ;;  %v1759_v2 = vmax.f32 %v1515_v57, 0.0  ;;  %v1665_v6 = vmax.f32 %v1139_v56, 0.0  ;;  %v4034_v50 = vld [vmem:[%s5631_s0 + $0x230] ss:$8 sps:$4 sm:$0xff]  }
 0x146   :  { %v1141_v58 = vpop.f32.mrf.mxu0  ;;  %v1517_v61 = vpop.f32.mrf.mxu1  ;;  %v4042_v56 = vld [vmem:[%s5631_s0 + $0x244] ss:$8 sps:$4 sm:$0xff]  }
 0x147   :  { %v1142_v62 = vadd.f32 %v4627_v53, %v1141_v58  ;;  %v1877_v63 = vsel %vm1870_vm0, %v1874_v26, %v1876_v52  ;;  %v1518_v3 = vadd.f32 %v4627_v53, %v1517_v61 }
 0x148   :  { %v1143_v4 = vpop.f32.mrf.mxu0  ;;  %1884 = vrot.lane.b32.xlu1 %v1877_v63, %s4180_s22  ;;  %v1519_v5 = vpop.f32.mrf.mxu1 }
 0x149   :  { %v1666_v7 = vmax.f32 %v1142_v62, 0.0  ;;  %v1760_v8 = vmax.f32 %v1518_v3, 0.0  ;;  %v2036_v5 = vrot.slane %v4701_v31, 4 }
 0x14a   :  { %v1146_v9 = vpop.f32.mrf.mxu0  ;;  %1337 = vmatmul.mubr.bf16.gmra.mxu0 %v4022_v60  ;;  %v1522_v10 = vpop.f32.mrf.mxu1 }
 0x14b   :  { %v4758_v15 = vpack.c.bf16 %v1666_v7, %v1665_v6  ;;  %1344 = vmatprep.mubr.bf16.mxu0 %v4030_v1  ;;  %v4760_v16 = vpack.c.bf16 %v1760_v8, %v1759_v2  ;;  %v1147_v20 = vadd.f32 %v4627_v53, %v1146_v9  ;;  %v1523_v21 = vadd.f32 %v4627_v53, %v1522_v10 }
 0x14c   :  { %v1148_v17 = vpop.f32.mrf.mxu0  ;;  %v1524_v18 = vpop.f32.mrf.mxu1  ;;  %v5647_v10 = vrot.slane %v4689_v14, 4 }
 0x14d   :  { %v5649_v19 = vrot.slane %v4758_v15, 4  ;;  %v1761_v28 = vmax.f32 %v1523_v21, 0.0  ;;  %v1667_v36 = vmax.f32 %v1147_v20, 0.0  ;;  %v4040_v20 = vld [vmem:[%s5631_s0 + $0x240] ss:$8 sps:$4 sm:$0xff]  }
 0x14e   :  { %v1149_v22 = vpop.f32.mrf.mxu0  ;;  %v1525_v25 = vpop.f32.mrf.mxu1 }
 0x14f   :  { %v1150_v26 = vadd.f32 %v4627_v53, %v1149_v22  ;;  %v1526_v29 = vadd.f32 %v4627_v53, %v1525_v25  ;;  %v4776_v30 = vsel %vm1870_vm0, %v1876_v52, %v5649_v19  ;;  %v4048_v22 = vld [vmem:[%s5631_s0 + $0x254] ss:$8 sps:$4 sm:$0xff]  }
 0x150   :  { %v1151_v32 = vpop.f32.mrf.mxu0  ;;  %v1527_v35 = vpop.f32.mrf.mxu1 }
 0x151   :  { %v1668_v37 = vmax.f32 %v1150_v26, 0.0  ;;  %v1762_v38 = vmax.f32 %v1526_v29, 0.0  ;;  %v4809_v26 = vsel %vm1870_vm0, %v5647_v10, %v2036_v5 }
 0x152   :  { %v1154_v39 = vpop.f32.mrf.mxu0  ;;  %1345 = vmatmul.mubr.bf16.gmra.mxu0 %v4028_v24  ;;  %v1530_v40 = vpop.f32.mrf.mxu1 }
 0x153   :  { %v1802_v41 = vpack.c.bf16 %v1668_v37, %v1667_v36  ;;  %1352 = vmatprep.mubr.bf16.mxu0 %v4036_v27  ;;  %v4778_v42 = vpack.c.bf16 %v1762_v38, %v1761_v28  ;;  %v1155_v45 = vadd.f32 %v4627_v53, %v1154_v39  ;;  %v1531_v46 = vadd.f32 %v4627_v53, %v1530_v40 }
 0x154   :  { %v1156_v43 = vpop.f32.mrf.mxu0  ;;  %v1532_v44 = vpop.f32.mrf.mxu1  ;;  %v2038_v39 = vrot.slane %v4715_v59, 4  ;;  %v4052_v59 = vld [vmem:[%s5631_s0 + $0x264] ss:$8 sps:$4 sm:$0xff]  }
 0x155   :  { %5650 = vst [vmem:[#allocation3_spill] sm:$0xff] %v4778_v42  ;;  %1895 = vrot.lane.b32.xlu1 %v1802_v41, %s4181_s16  ;;  %v1763_v57 = vmax.f32 %v1531_v46, 0.0  ;;  %v1669_v62 = vmax.f32 %v1155_v45, 0.0 }
 0x156   :  { %v1157_v47 = vpop.f32.mrf.mxu0  ;;  %v1533_v51 = vpop.f32.mrf.mxu1 }
 0x157   :  { %v1158_v52 = vadd.f32 %v4627_v53, %v1157_v47  ;;  %v1534_v58 = vadd.f32 %v4627_v53, %v1533_v51  ;;  %v4046_v47 = vld [vmem:[%s5631_s0 + $0x250] ss:$8 sps:$4 sm:$0xff]  }
 0x158   :  { %v1159_v60 = vpop.f32.mrf.mxu0  ;;  %v1535_v61 = vpop.f32.mrf.mxu1 }
 0x159   :  { %v1670_v63 = vmax.f32 %v1158_v52, 0.0  ;;  %v1764_v1 = vmax.f32 %v1534_v58, 0.0 }
 0x15a   :  { %v1162_v2 = vpop.f32.mrf.mxu0  ;;  %1353 = vmatmul.mubr.bf16.gmra.mxu0 %v4034_v50  ;;  %v1538_v3 = vpop.f32.mrf.mxu1 }
 0x15b   :  { %v1803_v4 = vpack.c.bf16 %v1670_v63, %v1669_v62  ;;  %1360 = vmatprep.mubr.bf16.mxu0 %v4042_v56  ;;  %v4792_v6 = vpack.c.bf16 %v1764_v1, %v1763_v57  ;;  %v1163_v9 = vadd.f32 %v4627_v53, %v1162_v2  ;;  %v1539_v17 = vadd.f32 %v4627_v53, %v1538_v3 }
 0x15c   :  { %v1164_v7 = vpop.f32.mrf.mxu0  ;;  %v1540_v8 = vpop.f32.mrf.mxu1  ;;  %v4826_v57 = vsel %vm1870_vm0, %v2036_v5, %v2038_v39 }
 0x15d   :  { %5651 = vst [vmem:[#allocation4_spill] sm:$0xff] %v4792_v6  ;;  %1897 = vrot.lane.b32.xlu1 %v1803_v4, %s4181_s16  ;;  %v1765_v24 = vmax.f32 %v1539_v17, 0.0  ;;  %v1671_v29 = vmax.f32 %v1163_v9, 0.0  ;;  %v5644_v4 = vrot.slane %v4730_v23, 4 }
 0x15e   :  { %v1165_v18 = vpop.f32.mrf.mxu0  ;;  %v1541_v21 = vpop.f32.mrf.mxu1 }
 0x15f   :  { %v1166_v31 = vadd.f32 %v4627_v53, %v1165_v18  ;;  %v1542_v25 = vadd.f32 %v4627_v53, %v1541_v21  ;;  %v4050_v18 = vld [vmem:[%s5631_s0 + $0x260] ss:$8 sps:$4 sm:$0xff]   ;;  %v4058_v21 = vld [vmem:[%s5631_s0 + $0x274] ss:$8 sps:$4 sm:$0xff]  }
 0x160   :  { %v1167_v27 = vpop.f32.mrf.mxu0  ;;  %v1543_v28 = vpop.f32.mrf.mxu1 }
 0x161   :  { %v1672_v32 = vmax.f32 %v1166_v31, 0.0  ;;  %v1766_v35 = vmax.f32 %v1542_v25, 0.0 }
 0x162   :  { %v1170_v36 = vpop.f32.mrf.mxu0  ;;  %1361 = vmatmul.mubr.bf16.gmra.mxu0 %v4040_v20  ;;  %v1546_v37 = vpop.f32.mrf.mxu1 }
 0x163   :  { %v1804_v38 = vpack.c.bf16 %v1672_v32, %v1671_v29  ;;  %1368 = vmatprep.mubr.bf16.mxu0 %v4048_v22  ;;  %v4812_v40 = vpack.c.bf16 %v1766_v35, %v1765_v24  ;;  %v1547_v41 = vadd.f32 %v4627_v53, %v1546_v37  ;;  %v1171_v45 = vadd.f32 %v4627_v53, %v1170_v36 }
 0x164   :  { %v1172_v43 = vpop.f32.mrf.mxu0  ;;  %v1548_v44 = vpop.f32.mrf.mxu1  ;;  %v4844_v24 = vsel %vm1870_vm0, %v2038_v39, %v5644_v4 }
 0x165   :  { %1899 = vrot.lane.b32.xlu1 %v1804_v38, %s4181_s16  ;;  %v1767_v52 = vmax.f32 %v1547_v41, 0.0  ;;  %v1673_v61 = vmax.f32 %v1171_v45, 0.0 }
 0x166   :  { %v1173_v46 = vpop.f32.mrf.mxu0  ;;  %v1549_v50 = vpop.f32.mrf.mxu1 }
 0x167   :  { %v1174_v51 = vadd.f32 %v4627_v53, %v1173_v46  ;;  %v1550_v56 = vadd.f32 %v4627_v53, %v1549_v50  ;;  %v4056_v46 = vld [vmem:[%s5631_s0 + $0x270] ss:$8 sps:$4 sm:$0xff]  }
 0x168   :  { %v1175_v58 = vpop.f32.mrf.mxu0  ;;  %v1551_v60 = vpop.f32.mrf.mxu1 }
 0x169   :  { %v1674_v62 = vmax.f32 %v1174_v51, 0.0  ;;  %v1768_v63 = vmax.f32 %v1550_v56, 0.0 }
 0x16a   :  { %v1178_v1 = vpop.f32.mrf.mxu0  ;;  %1369 = vmatmul.mubr.bf16.gmra.mxu0 %v4046_v47  ;;  %v1554_v2 = vpop.f32.mrf.mxu1 }
 0x16b   :  { %v4828_v3 = vpack.c.bf16 %v1674_v62, %v1673_v61  ;;  %1376 = vmatprep.mubr.bf16.mxu0 %v4052_v59  ;;  %v4831_v7 = vpack.c.bf16 %v1768_v63, %v1767_v52  ;;  %v1555_v8 = vadd.f32 %v4627_v53, %v1554_v2  ;;  %v1179_v36 = vadd.f32 %v4627_v53, %v1178_v1  ;;  %v4063_v59 = vld [vmem:[%s5631_s0 + $0x284] ss:$8 sps:$4 sm:$0xff]  }
 0x16c   :  { %v1180_v9 = vpop.f32.mrf.mxu0  ;;  %v1556_v5 = vpop.f32.mrf.mxu1 }
 0x16d   :  { %v1769_v31 = vmax.f32 %v1555_v8, 0.0  ;;  %v1675_v50 = vmax.f32 %v1179_v36, 0.0 }
 0x16e   :  { %v1181_v17 = vpop.f32.mrf.mxu0  ;;  %v1557_v20 = vpop.f32.mrf.mxu1 }
 0x16f   :  { %v1558_v22 = vadd.f32 %v4627_v53, %v1557_v20  ;;  %v1182_v28 = vadd.f32 %v4627_v53, %v1181_v17 }
 0x170   :  { %v1183_v25 = vpop.f32.mrf.mxu0  ;;  %v1559_v27 = vpop.f32.mrf.mxu1 }
 0x171   :  { %v1770_v29 = vmax.f32 %v1558_v22, 0.0  ;;  %v1676_v44 = vmax.f32 %v1182_v28, 0.0  ;;  %v4061_v25 = vld [vmem:[%s5631_s0 + $0x280] ss:$8 sps:$4 sm:$0xff]   ;;  %v4067_v27 = vld [vmem:[%s5631_s0 + $0x294] ss:$8 sps:$4 sm:$0xff]  }
 0x172   :  { %v1186_v32 = vpop.f32.mrf.mxu0  ;;  %1377 = vmatmul.mubr.bf16.gmra.mxu0 %v4050_v18  ;;  %v1562_v35 = vpop.f32.mrf.mxu1 }
 0x173   :  { %1384 = vmatprep.mubr.bf16.mxu0 %v4058_v21  ;;  %v4848_v37 = vpack.c.bf16 %v1770_v29, %v1769_v31  ;;  %v1563_v38 = vadd.f32 %v4627_v53, %v1562_v35  ;;  %v1187_v39 = vadd.f32 %v4627_v53, %v1186_v32  ;;  %v4860_v61 = vpack.c.bf16 %v1676_v44, %v1675_v50  ;;  %v4086_v32 = vld [vmem:[%s5633_s3 + $0x78] sm:$0xff]  }
 0x174   :  { %v1188_v41 = vpop.f32.mrf.mxu0  ;;  %v1564_v43 = vpop.f32.mrf.mxu1  ;;  %v4087_v44 = vld [vmem:[%s5633_s3 + $0x38] sm:$0xff]   ;;  %3661 = vmatprep.subr.bf16.mxu1 %v4086_v32 }
 0x175   :  { %v1771_v52 = vmax.f32 %v1563_v38, 0.0  ;;  %v1677_v62 = vmax.f32 %v1187_v39, 0.0  ;;  %v1909_v31 = vrot.slane %v4860_v61, 4  ;;  %3662 = vmatpush3.bf16.msra.mxu1 %v4087_v44 }
 0x176   :  { %v1189_v45 = vpop.f32.mrf.mxu0  ;;  %v1565_v47 = vpop.f32.mrf.mxu1 }
 0x177   :  { %v1190_v51 = vadd.f32 %v4627_v53, %v1189_v45  ;;  %v1566_v56 = vadd.f32 %v4627_v53, %v1565_v47 }
 0x178   :  { %v1191_v58 = vpop.f32.mrf.mxu0  ;;  %v1567_v60 = vpop.f32.mrf.mxu1 }
 0x179   :  { %v1678_v63 = vmax.f32 %v1190_v51, 0.0  ;;  %v1772_v1 = vmax.f32 %v1566_v56, 0.0  ;;  %v4065_v60 = vld [vmem:[%s5631_s0 + $0x290] ss:$8 sps:$4 sm:$0xff]  }
 0x17a   :  { %v1194_v2 = vpop.f32.mrf.mxu0  ;;  %1385 = vmatmul.mubr.bf16.gmra.mxu0 %v4056_v46  ;;  %v1570_v8 = vpop.f32.mrf.mxu1 }
 0x17b   :  { %v1807_v9 = vpack.c.bf16 %v1678_v63, %v1677_v62  ;;  %v1195_v5 = vadd.f32 %v4627_v53, %v1194_v2  ;;  %1392 = vmatprep.mubr.bf16.mxu0 %v4063_v59  ;;  %v4863_v17 = vpack.c.bf16 %v1772_v1, %v1771_v52  ;;  %v1571_v18 = vadd.f32 %v4627_v53, %v1570_v8  ;;  %v4073_v2 = vld [vmem:[%s5631_s0 + $0x2a4] ss:$8 sps:$4 sm:$0xff]  }
 0x17c   :  { %v1196_v20 = vpop.f32.mrf.mxu0  ;;  %v1572_v21 = vpop.f32.mrf.mxu1 }
 0x17d   :  { %v1910_v22 = vrot.slane %v1807_v9, 4  ;;  %v1679_v28 = vmax.f32 %v1195_v5, 0.0  ;;  %v1773_v41 = vmax.f32 %v1571_v18, 0.0 }
 0x17e   :  { %v1197_v29 = vpop.f32.mrf.mxu0  ;;  %v1573_v35 = vpop.f32.mrf.mxu1 }
 0x17f   :  { %v1198_v36 = vadd.f32 %v4627_v53, %v1197_v29  ;;  %v1911_v38 = vsel %vm1870_vm0, %v1909_v31, %v1910_v22  ;;  %v1574_v43 = vadd.f32 %v4627_v53, %v1573_v35 }
 0x180   :  { %v1199_v39 = vpop.f32.mrf.mxu0  ;;  %1918 = vrot.lane.b32.xlu1 %v1911_v38, %s4182_s27  ;;  %v1575_v45 = vpop.f32.mrf.mxu1 }
 0x181   :  { %v1680_v46 = vmax.f32 %v1198_v36, 0.0  ;;  %v1774_v47 = vmax.f32 %v1574_v43, 0.0 }
 0x182   :  { %v1202_v50 = vpop.f32.mrf.mxu0  ;;  %1393 = vmatmul.mubr.bf16.gmra.mxu0 %v4061_v25  ;;  %v1578_v51 = vpop.f32.mrf.mxu1 }
 0x183   :  { %v1808_v59 = vpack.c.bf16 %v1680_v46, %v1679_v28  ;;  %v1203_v52 = vadd.f32 %v4627_v53, %v1202_v50  ;;  %1400 = vmatprep.mubr.bf16.mxu0 %v4067_v27  ;;  %v4884_v56 = vpack.c.bf16 %v1774_v47, %v1773_v41  ;;  %v1579_v8 = vadd.f32 %v4627_v53, %v1578_v51  ;;  %v4076_v46 = vld [vmem:[%s5631_s0 + $0x2b4] ss:$8 sps:$4 sm:$0xff]  }
 0x184   :  { %v1204_v58 = vpop.f32.mrf.mxu0  ;;  %v1580_v62 = vpop.f32.mrf.mxu1 }
 0x185   :  { %v1912_v63 = vrot.slane %v1808_v59, 4  ;;  %v1681_v1 = vmax.f32 %v1203_v52, 0.0  ;;  %v1775_v21 = vmax.f32 %v1579_v8, 0.0 }
 0x186   :  { %v1205_v9 = vpop.f32.mrf.mxu0  ;;  %v1581_v5 = vpop.f32.mrf.mxu1 }
 0x187   :  { %v1206_v18 = vadd.f32 %v4627_v53, %v1205_v9  ;;  %v1913_v20 = vsel %vm1870_vm0, %v1910_v22, %v1912_v63  ;;  %v1582_v31 = vadd.f32 %v4627_v53, %v1581_v5  ;;  %v4071_v22 = vld [vmem:[%s5631_s0 + $0x2a0] ss:$8 sps:$4 sm:$0xff]  }
 0x188   :  { %v1207_v25 = vpop.f32.mrf.mxu0  ;;  %1920 = vrot.lane.b32.xlu1 %v1913_v20, %s4182_s27  ;;  %v1583_v27 = vpop.f32.mrf.mxu1 }
 0x189   :  { %v1682_v28 = vmax.f32 %v1206_v18, 0.0  ;;  %v1776_v29 = vmax.f32 %v1582_v31, 0.0  ;;  %v4074_v27 = vld [vmem:[%s5631_s0 + $0x2b0] ss:$8 sps:$4 sm:$0xff]  }
 0x18a   :  { %v1210_v32 = vpop.f32.mrf.mxu0  ;;  %1401 = vmatmul.mubr.bf16.gmra.mxu0 %v4065_v60  ;;  %v1586_v35 = vpop.f32.mrf.mxu1 }
 0x18b   :  { %v1809_v36 = vpack.c.bf16 %v1682_v28, %v1681_v1  ;;  %v1211_v38 = vadd.f32 %v4627_v53, %v1210_v32  ;;  %1408 = vmatprep.mubr.bf16.mxu0 %v4073_v2  ;;  %v4898_v41 = vpack.c.bf16 %v1776_v29, %v1775_v21  ;;  %v1587_v47 = vadd.f32 %v4627_v53, %v1586_v35  ;;  %v4088_v29 = vld [vmem:[%s5633_s3 + $0x70] sm:$0xff]  }
 0x18c   :  { %v1212_v43 = vpop.f32.mrf.mxu0  ;;  %v1588_v44 = vpop.f32.mrf.mxu1  ;;  %3663 = vmatprep.subr.bf16.mxu1 %v4088_v29 }
 0x18d   :  { %v1914_v39 = vrot.slane %v1809_v36, 4  ;;  %v1683_v45 = vmax.f32 %v1211_v38, 0.0  ;;  %v1777_v58 = vmax.f32 %v1587_v47, 0.0  ;;  %v4928_v36 = vld [vmem:[%s5632_s2] ss:$0 sm:$0xff] }
 0x18e   :  { %v1213_v50 = vpop.f32.mrf.mxu0  ;;  %v1589_v51 = vpop.f32.mrf.mxu1  ;;  %v4079_v43 = vld [vmem:[%s5631_s0 + $0x2c4] ss:$8 sps:$4 sm:$0xff]  }
 0x18f   :  { %v1214_v59 = vadd.f32 %v4627_v53, %v1213_v50  ;;  %v4909_v52 = vsel %vm1870_vm0, %v1912_v63, %v1914_v39  ;;  %v1590_v60 = vadd.f32 %v4627_v53, %v1589_v51 }
 0x190   :  { %v1215_v62 = vpop.f32.mrf.mxu0  ;;  %v1591_v1 = vpop.f32.mrf.mxu1 }
 0x191   :  { %v1684_v2 = vmax.f32 %v1214_v59, 0.0  ;;  %v1778_v8 = vmax.f32 %v1590_v60, 0.0 }
 0x192   :  { %v1218_v9 = vpop.f32.mrf.mxu0  ;;  %1409 = vmatmul.mubr.bf16.gmra.mxu0 %v4071_v22  ;;  %v1594_v5 = vpop.f32.mrf.mxu1 }
 0x193   :  { %v4912_v18 = vpack.c.bf16 %v1684_v2, %v1683_v45  ;;  %1416 = vmatprep.mubr.bf16.mxu0 %v4076_v46  ;;  %v4914_v20 = vpack.c.bf16 %v1778_v8, %v1777_v58  ;;  %v1219_v25 = vadd.f32 %v4627_v53, %v1218_v9  ;;  %v1595_v28 = vadd.f32 %v4627_v53, %v1594_v5  ;;  %v4089_v8 = vld [vmem:[%s5633_s3 + $0x30] sm:$0xff]  }
 0x194   :  { %v1220_v21 = vpop.f32.mrf.mxu0  ;;  %v1596_v31 = vpop.f32.mrf.mxu1  ;;  %3664 = vmatpush3.bf16.msra.mxu1 %v4089_v8  ;;  %v4080_v8 = vld [vmem:[%s5631_s0 + $0x2d0] ss:$8 sps:$4 sm:$0xff]  }
 0x195   :  { %v5648_v63 = vrot.slane %v4912_v18, 4  ;;  %v1779_v22 = vmax.f32 %v1595_v28, 0.0  ;;  %v1685_v47 = vmax.f32 %v1219_v25, 0.0  ;;  %v4077_v21 = vld [vmem:[%s5631_s0 + $0x2c0] ss:$8 sps:$4 sm:$0xff]  }
 0x196   :  { %v1221_v32 = vpop.f32.mrf.mxu0  ;;  %v1597_v35 = vpop.f32.mrf.mxu1 }
 0x197   :  { %v1222_v38 = vadd.f32 %v4928_v36, %v1221_v32  ;;  %v4937_v53 = vsel %vm1870_vm0, %v1914_v39, %v5648_v63  ;;  %v1598_v44 = vadd.f32 %v4928_v36, %v1597_v35 }
 0x198   :  { %v1223_v45 = vpop.f32.mrf.mxu0  ;;  %v1599_v46 = vpop.f32.mrf.mxu1 }
 0x199   :  { %v1686_v50 = vmax.f32 %v1222_v38, 0.0  ;;  %v1780_v51 = vmax.f32 %v1598_v44, 0.0 }
 0x19a   :  { %v1226_v59 = vpop.f32.mrf.mxu0  ;;  %1417 = vmatmul.mubr.bf16.gmra.mxu0 %v4074_v27  ;;  %v1602_v58 = vpop.f32.mrf.mxu1  ;;  %v4082_v27 = vld [vmem:[%s5631_s0 + $0x2d4] ss:$8 sps:$4 sm:$0xff]  }
 0x19b   :  { %v4940_v60 = vpack.c.bf16 %v1686_v50, %v1685_v47  ;;  %1424 = vmatprep.mubr.bf16.mxu0 %v4079_v43  ;;  %v4942_v62 = vpack.c.bf16 %v1780_v51, %v1779_v22  ;;  %v1227_v2 = vadd.f32 %v4928_v36, %v1226_v59  ;;  %v1603_v9 = vadd.f32 %v4928_v36, %v1602_v58 }
 0x19c   :  { %v1228_v1 = vpop.f32.mrf.mxu0  ;;  %v1604_v39 = vpop.f32.mrf.mxu1  ;;  %v2060_v47 = vrot.slane %v4848_v37, 4  ;;  %v4085_v37 = vld [vmem:[%s5631_s0 + $0x2e4] ss:$8 sps:$4 sm:$0xff]  }
 0x19d   :  { %v1781_v28 = vmax.f32 %v1603_v9, 0.0  ;;  %v1687_v38 = vmax.f32 %v1227_v2, 0.0  ;;  %v5646_v1 = vrot.slane %v4831_v7, 4 }
 0x19e   :  { %v1229_v5 = vpop.f32.mrf.mxu0  ;;  %v1605_v31 = vpop.f32.mrf.mxu1 }
 0x19f   :  { %v1230_v25 = vadd.f32 %v4928_v36, %v1229_v5  ;;  %v1606_v29 = vadd.f32 %v4928_v36, %v1605_v31 }
 0x1a0   :  { %v1231_v32 = vpop.f32.mrf.mxu0  ;;  %v1607_v35 = vpop.f32.mrf.mxu1 }
 0x1a1   :  { %v1688_v43 = vmax.f32 %v1230_v25, 0.0  ;;  %v1782_v22 = vmax.f32 %v1606_v29, 0.0  ;;  %v4976_v25 = vsel %vm1870_vm0, %v5646_v1, %v2060_v47 }
 0x1a2   :  { %v1234_v44 = vpop.f32.mrf.mxu0  ;;  %1425 = vmatmul.mubr.bf16.gmra.mxu0 %v4077_v21  ;;  %v1610_v45 = vpop.f32.mrf.mxu1 }
 0x1a3   :  { %v4957_v46 = vpack.c.bf16 %v1688_v43, %v1687_v38  ;;  %1432 = vmatprep.mubr.bf16.mxu0 %v4082_v27  ;;  %v4960_v50 = vpack.c.bf16 %v1782_v22, %v1781_v28  ;;  %v1235_v58 = vadd.f32 %v4928_v36, %v1234_v44  ;;  %v1611_v39 = vadd.f32 %v4928_v36, %v1610_v45 }
 0x1a4   :  { %v1236_v51 = vpop.f32.mrf.mxu0  ;;  %v1612_v59 = vpop.f32.mrf.mxu1  ;;  %v2062_v22 = vrot.slane %v4863_v17, 4 }
 0x1a5   :  { %v1783_v21 = vmax.f32 %v1611_v39, 0.0  ;;  %v1689_v29 = vmax.f32 %v1235_v58, 0.0  ;;  %v4083_v58 = vld [vmem:[%s5631_s0 + $0x2e0] ss:$8 sps:$4 sm:$0xff]  }
 0x1a6   :  { %v1237_v2 = vpop.f32.mrf.mxu0  ;;  %v1613_v9 = vpop.f32.mrf.mxu1 }
 0x1a7   :  { %v1238_v5 = vadd.f32 %v4928_v36, %v1237_v2  ;;  %v1614_v31 = vadd.f32 %v4928_v36, %v1613_v9 }
 0x1a8   :  { %v1239_v27 = vpop.f32.mrf.mxu0  ;;  %v1615_v28 = vpop.f32.mrf.mxu1 }
 0x1a9   :  { %v1690_v32 = vmax.f32 %v1238_v5, 0.0  ;;  %v1784_v35 = vmax.f32 %v1614_v31, 0.0 }
 0x1aa   :  { %v1242_v38 = vpop.f32.mrf.mxu0  ;;  %1433 = vmatmul.mubr.bf16.gmra.mxu0 %v4080_v8  ;;  %v1618_v45 = vpop.f32.mrf.mxu1 }
 0x1ab   :  { %v4978_v43 = vpack.c.bf16 %v1690_v32, %v1689_v29  ;;  %1440 = vmatprep.mubr.bf16.mxu0 %v4085_v37  ;;  %v4981_v44 = vpack.c.bf16 %v1784_v35, %v1783_v21  ;;  %v1619_v59 = vadd.f32 %v4928_v36, %v1618_v45  ;;  %v1243_v39 = vadd.f32 %v4928_v36, %v1242_v38 }
 0x1ac   :  { %v1244_v51 = vpop.f32.mrf.mxu0  ;;  %v1620_v2 = vpop.f32.mrf.mxu1  ;;  %v4990_v37 = vsel %vm1870_vm0, %v2060_v47, %v2062_v22  ;;  %v5645_v45 = vrot.slane %v4884_v56, 4  ;;  %v4091_v47 = vld [vmem:[%s5633_s3 + $0x28] sm:$0xff]  }
 0x1ad   :  { %v1785_v21 = vmax.f32 %v1619_v59, 0.0  ;;  %v1691_v27 = vmax.f32 %v1243_v39, 0.0  ;;  %v4090_v51 = vld [vmem:[%s5633_s3 + $0x68] sm:$0xff]   ;;  %v2095_v39 = vrot.slane %v4981_v44, 4 }
 0x1ae   :  { %v1245_v9 = vpop.f32.mrf.mxu0  ;;  %v1621_v5 = vpop.f32.mrf.mxu1  ;;  %3665 = vmatprep.subr.bf16.mxu1 %v4090_v51 }
 0x1af   :  { %v1246_v8 = vadd.f32 %v4928_v36, %v1245_v9  ;;  %v1622_v31 = vadd.f32 %v4928_v36, %v1621_v5  ;;  %3666 = vmatpush3.bf16.msra.mxu1 %v4091_v47 }
 0x1b0   :  { %v1247_v17 = vpop.f32.mrf.mxu0  ;;  %v1623_v29 = vpop.f32.mrf.mxu1 }
 0x1b1   :  { %v1692_v28 = vmax.f32 %v1246_v8, 0.0  ;;  %v1786_v35 = vmax.f32 %v1622_v31, 0.0  ;;  %v5007_v31 = vsel %vm1870_vm0, %v2062_v22, %v5645_v45 }
 0x1b2   :  { %v1250_v32 = vpop.f32.mrf.mxu0  ;;  %1441 = vmatmul.mubr.bf16.gmra.mxu0 %v4083_v58  ;;  %v1626_v9 = vpop.f32.mrf.mxu1 }
 0x1b3   :  { %v4993_v38 = vpack.c.bf16 %v1692_v28, %v1691_v27  ;;  %v1861_v2 = vpack.c.bf16 %v1786_v35, %v1785_v21  ;;  %v1627_v5 = vadd.f32 %v4928_v36, %v1626_v9  ;;  %v1251_v47 = vadd.f32 %v4928_v36, %v1250_v32 }
 0x1b4   :  { %v1252_v59 = vpop.f32.mrf.mxu0  ;;  %v1628_v17 = vpop.f32.mrf.mxu1 }
 0x1b5   :  { %v2096_v8 = vrot.slane %v1861_v2, 4  ;;  %v1787_v51 = vmax.f32 %v1627_v5, 0.0  ;;  %v1693_v45 = vmax.f32 %v1251_v47, 0.0 }
 0x1b6   :  { %v1253_v58 = vpop.f32.mrf.mxu0  ;;  %v1629_v21 = vpop.f32.mrf.mxu1 }
 0x1b7   :  { %v5010_v28 = vsel %vm1870_vm0, %v2095_v39, %v2096_v8  ;;  %v1254_v29 = vadd.f32 %v4928_v36, %v1253_v58  ;;  %v1630_v59 = vadd.f32 %v4928_v36, %v1629_v21 }
 0x1b8   :  { %v1255_v27 = vpop.f32.mrf.mxu0  ;;  %v1631_v2 = vpop.f32.mrf.mxu1 }
 0x1b9   :  { %v1788_v17 = vmax.f32 %v1630_v59, 0.0  ;;  %v1694_v0 = vmax.f32 %v1254_v29, 0.0 }
 0x1ba   :  { %v1258_v35 = vpop.f32.mrf.mxu0  ;;  %v1634_v21 = vpop.f32.mrf.mxu1 }
 0x1bb   :  { %v1259_v22 = vadd.f32 %v4928_v36, %v1258_v35  ;;  %v1862_v27 = vpack.c.bf16 %v1788_v17, %v1787_v51  ;;  %v5017_v10 = vpack.c.bf16 %v1694_v0, %v1693_v45  ;;  %v1635_v29 = vadd.f32 %v4928_v36, %v1634_v21 }
 0x1bc   :  { %v1260_v9 = vpop.f32.mrf.mxu0  ;;  %v1636_v35 = vpop.f32.mrf.mxu1 }
 0x1bd   :  { %v2098_v58 = vrot.slane %v1862_v27, 4  ;;  %v1695_v5 = vmax.f32 %v1259_v22, 0.0  ;;  %v1933_v51 = vrot.slane %v5017_v10, 4  ;;  %v1789_v45 = vmax.f32 %v1635_v29, 0.0 }
 0x1be   :  { %v1261_v4 = vpop.f32.mrf.mxu0 }
 0x1bf   :  { %v1262_v39 = vadd.f32 %v4928_v36, %v1261_v4  ;;  %v5020_v32 = vsel %vm1870_vm0, %v2096_v8, %v2098_v58 }
 0x1c0   :  { %v1263_v1 = vpop.f32.mrf.mxu0 }
 0x1c1   :  { %v1696_v63 = vmax.f32 %v1262_v39, 0.0  ;;  %v1637_v1 = vpop.f32.mrf.mxu1 }
 0x1c2   :  { %v1266_v19 = vpop.f32.mrf.mxu0  ;;  %v1638_v9 = vadd.f32 %v4928_v36, %v1637_v1  ;;  %v4092_v1 = vld [vmem:[%s5633_s3 + $0x60] sm:$0xff]  }
 0x1c3   :  { %v1816_v59 = vpack.c.bf16 %v1696_v63, %v1695_v5  ;;  %v1267_v4 = vadd.f32 %v4928_v36, %v1266_v19  ;;  %v1639_v22 = vpop.f32.mrf.mxu1  ;;  %3667 = vmatprep.subr.bf16.mxu1 %v4092_v1 }
 0x1c4   :  { %v1268_v2 = vpop.f32.mrf.mxu0  ;;  %v1790_v27 = vmax.f32 %v1638_v9, 0.0 }
 0x1c5   :  { %v1934_v47 = vrot.slane %v1816_v59, 4  ;;  %v1697_v39 = vmax.f32 %v1267_v4, 0.0 }
 0x1c6   :  { %v1269_v0 = vpop.f32.mrf.mxu0  ;;  %v1863_v59 = vpack.c.bf16 %v1790_v27, %v1789_v45 }
 0x1c7   :  { %v1270_v17 = vadd.f32 %v4928_v36, %v1269_v0  ;;  %v1935_v8 = vsel %vm1870_vm0, %v1933_v51, %v1934_v47  ;;  %v4093_v51 = vld [vmem:[%s5633_s3 + $0x20] sm:$0xff]   ;;  %v1642_v0 = vpop.f32.mrf.mxu1 }
 0x1c8   :  { %v1271_v63 = vpop.f32.mrf.mxu0  ;;  %1942 = vrot.lane.b32.xlu0 %v1935_v8, %s4180_s22  ;;  %v2100_v2 = vrot.slane %v1863_v59, 4  ;;  %v1643_v4 = vadd.f32 %v4928_v36, %v1642_v0  ;;  %3668 = vmatpush3.bf16.msra.mxu1 %v4093_v51 }
 0x1c9   :  { %v1698_v5 = vmax.f32 %v1270_v17, 0.0  ;;  %v1644_v22 = vpop.f32.mrf.mxu1 }
 0x1ca   :  { %v1274_v21 = vpop.f32.mrf.mxu0  ;;  %v5038_v45 = vsel %vm1870_vm0, %v2098_v58, %v2100_v2  ;;  %v1791_v59 = vmax.f32 %v1643_v4, 0.0 }
 0x1cb   :  { %v1817_v35 = vpack.c.bf16 %v1698_v5, %v1697_v39  ;;  %v1275_v29 = vadd.f32 %v4928_v36, %v1274_v21  ;;  %v1645_v5 = vpop.f32.mrf.mxu1 }
 0x1cc   :  { %v1276_v19 = vpop.f32.mrf.mxu0 }
 0x1cd   :  { %v1936_v6 = vrot.slane %v1817_v35, 4  ;;  %v1699_v27 = vmax.f32 %v1275_v29, 0.0  ;;  %v1646_v35 = vadd.f32 %v4928_v36, %v1645_v5  ;;  %v1647_v58 = vpop.f32.mrf.mxu1 }
 0x1ce   :  { %v1277_v9 = vpop.f32.mrf.mxu0 }
 0x1cf   :  { %v1278_v17 = vadd.f32 %v4928_v36, %v1277_v9  ;;  %v1937_v8 = vsel %vm1870_vm0, %v1934_v47, %v1936_v6  ;;  %v1792_v42 = vmax.f32 %v1646_v35, 0.0 }
 0x1d0   :  { %v1279_v63 = vpop.f32.mrf.mxu0  ;;  %1944 = vrot.lane.b32.xlu0 %v1937_v8, %s4180_s22 }
 0x1d1   :  { %v1700_v39 = vmax.f32 %v1278_v17, 0.0  ;;  %v5045_v22 = vpack.c.bf16 %v1792_v42, %v1791_v59 }
 0x1d2   :  { %v1282_v21 = vpop.f32.mrf.mxu0 }
 0x1d3   :  { %v1818_v19 = vpack.c.bf16 %v1700_v39, %v1699_v27  ;;  %v1283_v47 = vadd.f32 %v4928_v36, %v1282_v21  ;;  %v2102_v4 = vrot.slane %v5045_v22, 4 }
 0x1d4   :  { %v1284_v0 = vpop.f32.mrf.mxu0 }
 0x1d5   :  { %v1938_v9 = vrot.slane %v1818_v19, 4  ;;  %v1701_v17 = vmax.f32 %v1283_v47, 0.0  ;;  %v5054_v39 = vsel %vm1870_vm0, %v2100_v2, %v2102_v4 }
 0x1d6   :  { %v1285_v1 = vpop.f32.mrf.mxu0 }
 0x1d7   :  { %v1286_v8 = vadd.f32 %v4928_v36, %v1285_v1  ;;  %v1939_v29 = vsel %vm1870_vm0, %v1936_v6, %v1938_v9 }
 0x1d8   :  { %v1287_v51 = vpop.f32.mrf.mxu0  ;;  %1946 = vrot.lane.b32.xlu0 %v1939_v29, %s4180_s22 }
 0x1d9   :  { %v1702_v63 = vmax.f32 %v1286_v8, 0.0  ;;  %v4094_v51 = vld [vmem:[%s5633_s3 + $0x58] sm:$0xff]  }
 0x1da   :  { %v1290_v27 = vpop.f32.mrf.mxu0  ;;  %3669 = vmatprep.subr.bf16.mxu1 %v4094_v51 }
 0x1db   :  { %v5056_v5 = vpack.c.bf16 %v1702_v63, %v1701_v17  ;;  %v1291_v6 = vadd.f32 %v4928_v36, %v1290_v27 }
 0x1dc   :  { %v1292_v42 = vpop.f32.mrf.mxu0 }
 0x1dd   :  { %v1940_v21 = vrot.slane %v5056_v5, 4  ;;  %v1703_v0 = vmax.f32 %v1291_v6, 0.0 }
 0x1de   :  { %v1293_v59 = vpop.f32.mrf.mxu0 }
 0x1df   :  { %v1294_v35 = vadd.f32 %v4928_v36, %v1293_v59  ;;  %v1941_v19 = vsel %vm1870_vm0, %v1938_v9, %v1940_v21  ;;  %v4095_v9 = vld [vmem:[%s5633_s3 + $0x18] sm:$0xff]  }
 0x1e0   :  { %v1295_v58 = vpop.f32.mrf.mxu0  ;;  %1948 = vrot.lane.b32.xlu0 %v1941_v19, %s4180_s22  ;;  %3670 = vmatpush3.bf16.msra.mxu1 %v4095_v9 }
 0x1e1   :  { %v1704_v2 = vmax.f32 %v1294_v35, 0.0 }
 0x1e2   :  { %v1298_v47 = vpop.f32.mrf.mxu0 }
 0x1e3   :  { %v1820_v1 = vpack.c.bf16 %v1704_v2, %v1703_v0  ;;  %v1299_v29 = vadd.f32 %v4928_v36, %v1298_v47 }
 0x1e4   :  { %v1300_v8 = vpop.f32.mrf.mxu0 }
 0x1e5   :  { %1957 = vrot.lane.b32.xlu1 %v1820_v1, %s4181_s16  ;;  %v1705_v42 = vmax.f32 %v1299_v29, 0.0 }
 0x1e6   :  { %v1301_v17 = vpop.f32.mrf.mxu0 }
 0x1e7   :  { %v1302_v63 = vadd.f32 %v4928_v36, %v1301_v17 }
 0x1e8   :  { %v1303_v27 = vpop.f32.mrf.mxu0 }
 0x1e9   :  { %v1706_v6 = vmax.f32 %v1302_v63, 0.0  ;;  %1922 = vrot.lane.b32.xlu1 %v4909_v52, %s4182_s27  ;;  %v4096_v63 = vld [vmem:[%s5633_s3 + $0x50] sm:$0xff]  }
 0x1ea   :  { %v1306_v59 = vpop.f32.mrf.mxu0  ;;  %3671 = vmatprep.subr.bf16.mxu1 %v4096_v63 }
 0x1eb   :  { %v1821_v35 = vpack.c.bf16 %v1706_v6, %v1705_v42  ;;  %v1307_v58 = vadd.f32 %v4928_v36, %v1306_v59  ;;  %v5652_v59 = vrot.slane %v4758_v15, 4  ;;  %v4100_v15 = vld [vmem:[%s5633_s3 + $0x40] sm:$0xff]  }
 0x1ec   :  { %v1308_v19 = vpop.f32.mrf.mxu0 }
 0x1ed   :  { %1886 = vrot.lane.b32.xlu1 %v4776_v30, %s4180_s22  ;;  %1959 = vrot.lane.b32.xlu0 %v1821_v35, %s4181_s16  ;;  %v1707_v1 = vmax.f32 %v1307_v58, 0.0  ;;  %v4098_v19 = vld [vmem:[%s5633_s3 + $0x48] sm:$0xff]  }
 0x1ee   :  { %v1309_v0 = vpop.f32.mrf.mxu0 }
 0x1ef   :  { %v1310_v2 = vadd.f32 %v4928_v36, %v1309_v0  ;;  %v4099_v0 = vld [vmem:[%s5633_s3 + $0x8] sm:$0xff]  }
 0x1f0   :  { %v1311_v47 = vpop.f32.mrf.mxu0 }
 0x1f1   :  { %v1708_v8 = vmax.f32 %v1310_v2, 0.0  ;;  %1901 = vrot.lane.b32.xlu1 %v4828_v3, %s4181_s16  ;;  %v4097_v3 = vld [vmem:[%s5633_s3 + $0x10] sm:$0xff]   ;;  %v2033_v47 = vrot.slane %v4675_v55, 4 }
 0x1f2   :  { %v1314_v52 = vpop.f32.mrf.mxu0  ;;  %3672 = vmatpush3.bf16.msra.mxu1 %v4097_v3 }
 0x1f3   :  { %v1822_v29 = vpack.c.bf16 %v1708_v8, %v1707_v1  ;;  %v1315_v9 = vadd.f32 %v4928_v36, %v1314_v52  ;;  %3673 = vmatprep.subr.bf16.mxu1 %v4098_v19  ;;  %v4101_v8 = vld [vmem:[%s5633_s3] sm:$0xff]  }
 0x1f4   :  { %v1316_v51 = vpop.f32.mrf.mxu0 }
 0x1f5   :  { %1924 = vrot.lane.b32.xlu1 %v4937_v53, %s4182_s27  ;;  %1961 = vrot.lane.b32.xlu0 %v1822_v29, %s4181_s16  ;;  %v1709_v42 = vmax.f32 %v1315_v9, 0.0 }
 0x1f6   :  { %v1317_v30 = vpop.f32.mrf.mxu0  ;;  %3674 = vmatpush3.bf16.msra.mxu1 %v4099_v0 }
 0x1f7   :  { %v1318_v17 = vadd.f32 %v4928_v36, %v1317_v30  ;;  %3675 = vmatprep.subr.bf16.mxu1 %v4100_v15  ;;  %v5654_v30 = vrot.slane %v4689_v14, 4 }
 0x1f8   :  { %v1319_v27 = vpop.f32.mrf.mxu0 }
 0x1f9   :  { %v1710_v6 = vmax.f32 %v1318_v17, 0.0  ;;  %1888 = vrot.lane.b32.xlu1 %v5652_v59, %s4180_s22  ;;  %v2035_v17 = vsel %vm1870_vm0, %v2033_v47, %v5654_v30 }
 0x1fa   :  { %v1322_v53 = vpop.f32.mrf.mxu0  ;;  %3676 = vmatpush3.bf16.msra.mxu1 %v4101_v8 }
 0x1fb   :  { %v1823_v35 = vpack.c.bf16 %v1710_v6, %v1709_v42  ;;  %v1323_v51 = vadd.f32 %v4928_v36, %v1322_v53 }
 0x1fc   :  { %v1324_v58 = vpop.f32.mrf.mxu0 }
 0x1fd   :  { %1903 = vrot.lane.b32.xlu1 %v4860_v61, %s4181_s16  ;;  %1963 = vrot.lane.b32.xlu0 %v1823_v35, %s4181_s16  ;;  %v5653_v61 = vrot.slane %v4912_v18, 4  ;;  %v1711_v42 = vmax.f32 %v1323_v51, 0.0 }
 0x1fe   :  { %v1325_v2 = vpop.f32.mrf.mxu0 }
 0x1ff   :  { %v1326_v52 = vadd.f32 %v4928_v36, %v1325_v2 }
 0x200   :  { %v1327_v1 = vpop.f32.mrf.mxu0 }
 0x201   :  { %1926 = vrot.lane.b32.xlu1 %v5653_v61, %s4182_s27  ;;  %v1712_v63 = vmax.f32 %v1326_v52, 0.0 }
 0x202   :  { %v1330_v29 = vpop.f32.mrf.mxu0 }
 0x203   :  { %v1331_v27 = vadd.f32 %v4928_v36, %v1330_v29  ;;  %v1824_v59 = vpack.c.bf16 %v1712_v63, %v1711_v42 }
 0x204   :  { %v1332_v9 = vpop.f32.mrf.mxu0 }
 0x205   :  { %2042 = vrot.lane.b32.xlu1 %v2035_v17, %s4182_s27  ;;  %v1713_v35 = vmax.f32 %v1331_v27, 0.0  ;;  %v1971_v15 = vrot.slane %v1824_v59, 4 }
 0x206   :  { %v1333_v3 = vpop.f32.mrf.mxu0 }
 0x207   :  { %v1334_v6 = vadd.f32 %v4928_v36, %v1333_v3 }
 0x208   :  { %v1335_v18 = vpop.f32.mrf.mxu0 }
 0x209   :  { %v1714_v19 = vmax.f32 %v1334_v6, 0.0 }
 0x20a   :  { %v1338_v53 = vpop.f32.mrf.mxu0 }
 0x20b   :  { %v1825_v58 = vpack.c.bf16 %v1714_v19, %v1713_v35  ;;  %v1339_v2 = vadd.f32 %v4928_v36, %v1338_v53 }
 0x20c   :  { %v1340_v0 = vpop.f32.mrf.mxu0 }
 0x20d   :  { %v1972_v14 = vrot.slane %v1825_v58, 4  ;;  %v1715_v61 = vmax.f32 %v1339_v2, 0.0 }
 0x20e   :  { %v1341_v47 = vpop.f32.mrf.mxu0 }
 0x20f   :  { %v1342_v1 = vadd.f32 %v4928_v36, %v1341_v47  ;;  %v1973_v8 = vsel %vm1870_vm0, %v1971_v15, %v1972_v14 }
 0x210   :  { %v1343_v52 = vpop.f32.mrf.mxu0  ;;  %1980 = vrot.lane.b32.xlu0 %v1973_v8, %s4182_s27 }
 0x211   :  { %v1716_v29 = vmax.f32 %v1342_v1, 0.0 }
 0x212   :  { %v1346_v51 = vpop.f32.mrf.mxu0 }
 0x213   :  { %v1826_v9 = vpack.c.bf16 %v1716_v29, %v1715_v61  ;;  %v1347_v63 = vadd.f32 %v4928_v36, %v1346_v51 }
 0x214   :  { %v1348_v30 = vpop.f32.mrf.mxu0  ;;  %1950 = vrot.lane.b32.xlu0 %v1940_v21, %s4180_s22 }
 0x215   :  { %v1974_v17 = vrot.slane %v1826_v9, 4  ;;  %v1717_v18 = vmax.f32 %v1347_v63, 0.0 }
 0x216   :  { %v1349_v27 = vpop.f32.mrf.mxu0 }
 0x217   :  { %v1350_v3 = vadd.f32 %v4928_v36, %v1349_v27  ;;  %v1975_v42 = vsel %vm1870_vm0, %v1972_v14, %v1974_v17 }
 0x218   :  { %v1351_v6 = vpop.f32.mrf.mxu0  ;;  %1982 = vrot.lane.b32.xlu0 %v1975_v42, %s4182_s27 }
 0x219   :  { %v1718_v35 = vmax.f32 %v1350_v3, 0.0 }
 0x21a   :  { %v1354_v19 = vpop.f32.mrf.mxu0 }
 0x21b   :  { %v1827_v53 = vpack.c.bf16 %v1718_v35, %v1717_v18  ;;  %v1355_v21 = vadd.f32 %v4928_v36, %v1354_v19 }
 0x21c   :  { %v1356_v58 = vpop.f32.mrf.mxu0  ;;  %1965 = vrot.lane.b32.xlu0 %v1824_v59, %s4181_s16 }
 0x21d   :  { %v1976_v5 = vrot.slane %v1827_v53, 4  ;;  %v1719_v14 = vmax.f32 %v1355_v21, 0.0  ;;  %v5655_v53 = vrot.slane %v4831_v7, 4 }
 0x21e   :  { %v1357_v0 = vpop.f32.mrf.mxu0 }
 0x21f   :  { %v1358_v15 = vadd.f32 %v4928_v36, %v1357_v0  ;;  %v1977_v2 = vsel %vm1870_vm0, %v1974_v17, %v1976_v5  ;;  %v2057_v17 = vrot.slane %v4812_v40, 4 }
 0x220   :  { %v1359_v47 = vpop.f32.mrf.mxu0  ;;  %1984 = vrot.lane.b32.xlu0 %v1977_v2, %s4182_s27 }
 0x221   :  { %v1720_v1 = vmax.f32 %v1358_v15, 0.0  ;;  %v2059_v58 = vsel %vm1870_vm0, %v2057_v17, %v5655_v53 }
 0x222   :  { %v1362_v8 = vpop.f32.mrf.mxu0 }
 0x223   :  { %v1828_v52 = vpack.c.bf16 %v1720_v1, %v1719_v14  ;;  %v1363_v51 = vadd.f32 %v4928_v36, %v1362_v8 }
 0x224   :  { %v1364_v61 = vpop.f32.mrf.mxu0 }
 0x225   :  { %v1978_v29 = vrot.slane %v1828_v52, 4  ;;  %v1721_v63 = vmax.f32 %v1363_v51, 0.0 }
 0x226   :  { %v1365_v59 = vpop.f32.mrf.mxu0 }
 0x227   :  { %v1366_v9 = vadd.f32 %v4928_v36, %v1365_v59  ;;  %1988 = vrot.lane.b32.xlu0 %v1978_v29, %s4182_s27  ;;  %v1979_v42 = vsel %vm1870_vm0, %v1976_v5, %v1978_v29 }
 0x228   :  { %v1367_v30 = vpop.f32.mrf.mxu0 }
 0x229   :  { %v1722_v27 = vmax.f32 %v1366_v9, 0.0 }
 0x22a   :  { %v1370_v3 = vpop.f32.mrf.mxu0 }
 0x22b   :  { %v5145_v6 = vpack.c.bf16 %v1722_v27, %v1721_v63  ;;  %1986 = vrot.lane.b32.xlu0 %v1979_v42, %s4182_s27  ;;  %v1371_v35 = vadd.f32 %v4928_v36, %v1370_v3  ;;  %v4102_v3 = vld [vmem:[%s5633_s3 + $0xf8] sm:$0xff]  }
 0x22c   :  { %v1372_v18 = vpop.f32.mrf.mxu0  ;;  %3707 = vmatprep.subr.bf16.mxu1 %v4102_v3 }
 0x22d   :  { %v1723_v15 = vmax.f32 %v1371_v35, 0.0 }
 0x22e   :  { %v1373_v19 = vpop.f32.mrf.mxu0 }
 0x22f   :  { %v1374_v21 = vadd.f32 %v4928_v36, %v1373_v19  ;;  %2066 = vrot.lane.b32.xlu0 %v2059_v58, %s4180_s22 }
 0x230   :  { %v1375_v0 = vpop.f32.mrf.mxu0 }
 0x231   :  { %v1724_v2 = vmax.f32 %v1374_v21, 0.0 }
 0x232   :  { %v1378_v5 = vpop.f32.mrf.mxu0 }
 0x233   :  { %v5154_v47 = vpack.c.bf16 %v1724_v2, %v1723_v15  ;;  %2081 = vrot.lane.b32.xlu0 %v4898_v41, %s4181_s16  ;;  %v1379_v1 = vadd.f32 %v4928_v36, %v1378_v5 }
 0x234   :  { %v1380_v14 = vpop.f32.mrf.mxu0 }
 0x235   :  { %v1725_v61 = vmax.f32 %v1379_v1, 0.0 }
 0x236   :  { %v1381_v8 = vpop.f32.mrf.mxu0 }
 0x237   :  { %v1382_v7 = vadd.f32 %v4928_v36, %v1381_v8  ;;  %2104 = vrot.lane.b32.xlu0 %v5010_v28, %s4182_s27 }
 0x238   :  { %v1383_v52 = vpop.f32.mrf.mxu0 }
 0x239   :  { %v1726_v29 = vmax.f32 %v1382_v7, 0.0 }
 0x23a   :  { %v1386_v51 = vpop.f32.mrf.mxu0 }
 0x23b   :  { %v5162_v59 = vpack.c.bf16 %v1726_v29, %v1725_v61  ;;  %2068 = vrot.lane.b32.xlu0 %v4976_v25, %s4180_s22  ;;  %v1387_v41 = vadd.f32 %v4928_v36, %v1386_v51 }
 0x23c   :  { %v1388_v9 = vpop.f32.mrf.mxu0 }
 0x23d   :  { %v1727_v28 = vmax.f32 %v1387_v41, 0.0 }
 0x23e   :  { %v1389_v30 = vpop.f32.mrf.mxu0 }
 0x23f   :  { %v1390_v63 = vadd.f32 %v4928_v36, %v1389_v30  ;;  %2083 = vrot.lane.b32.xlu0 %v4914_v20, %s4181_s16 }
 0x240   :  { %v1391_v27 = vpop.f32.mrf.mxu0 }
 0x241   :  { %v1728_v17 = vmax.f32 %v1390_v63, 0.0  ;;  %v5198_v63 = vpop.permute.xlu1 %1882  ;;  %v5656_v27 = vrot.slane %v4884_v56, 4 }
 0x242   :  { %v1394_v42 = vpop.f32.mrf.mxu0 }
 0x243   :  { %v5173_v18 = vpack.c.bf16 %v1728_v17, %v1727_v28  ;;  %2106 = vrot.lane.b32.xlu0 %v5020_v32, %s4182_s27  ;;  %v1395_v58 = vadd.f32 %v4928_v36, %v1394_v42 }
 0x244   :  { %v1396_v25 = vpop.f32.mrf.mxu0 }
 0x245   :  { %v1729_v2 = vmax.f32 %v1395_v58, 0.0  ;;  %v5203_v17 = vpop.permute.xlu1 %1884 }
 0x246   :  { %v1397_v35 = vpop.f32.mrf.mxu0 }
 0x247   :  { %2070 = vrot.lane.b32.xlu0 %v4990_v37, %s4180_s22  ;;  %v1398_v19 = vadd.f32 %v4928_v36, %v1397_v35 }
 0x248   :  { %v1399_v20 = vpop.f32.mrf.mxu0 }
 0x249   :  { %v1730_v0 = vmax.f32 %v1398_v19, 0.0  ;;  %v5209_v25 = vpop.permute.xlu1 %1895 }
 0x24a   :  { %v1402_v53 = vpop.f32.mrf.mxu0 }
 0x24b   :  { %2085 = vrot.lane.b32.xlu0 %v4942_v62, %s4181_s16  ;;  %v1403_v15 = vadd.f32 %v4928_v36, %v1402_v53  ;;  %v5187_v14 = vpack.c.bf16 %v1730_v0, %v1729_v2 }
 0x24c   :  { %v1404_v21 = vpop.f32.mrf.mxu0 }
 0x24d   :  { %v1731_v1 = vmax.f32 %v1403_v15, 0.0  ;;  %v1995_v61 = vrot.slane %v5187_v14, 4  ;;  %v5215_v19 = vpop.permute.xlu1 %1897 }
 0x24e   :  { %v1405_v32 = vpop.f32.mrf.mxu0 }
 0x24f   :  { %v1406_v5 = vadd.f32 %v4928_v36, %v1405_v32  ;;  %2108 = vrot.lane.b32.xlu0 %v5038_v45, %s4182_s27 }
 0x250   :  { %v1407_v37 = vpop.f32.mrf.mxu0 }
 0x251   :  { %v1732_v8 = vmax.f32 %v1406_v5, 0.0  ;;  %v5220_v15 = vpop.permute.xlu1 %1899 }
 0x252   :  { %v1410_v7 = vpop.f32.mrf.mxu0 }
 0x253   :  { %v1834_v52 = vpack.c.bf16 %v1732_v8, %v1731_v1  ;;  %2072 = vrot.lane.b32.xlu0 %v5007_v31, %s4180_s22  ;;  %v1411_v58 = vadd.f32 %v4928_v36, %v1410_v7 }
 0x254   :  { %v1412_v62 = vpop.f32.mrf.mxu0 }
 0x255   :  { %v1996_v29 = vrot.slane %v1834_v52, 4  ;;  %v1733_v22 = vmax.f32 %v1411_v58, 0.0  ;;  %v1919_v8 = vpop.permute.xlu1 %1918 }
 0x256   :  { %v1413_v51 = vpop.f32.mrf.mxu0 }
 0x257   :  { %2087 = vrot.lane.b32.xlu0 %v4960_v50, %s4181_s16  ;;  %v1997_v45 = vsel %vm1870_vm0, %v1995_v61, %v1996_v29  ;;  %v1881_v50 = vpop.permute.xlu0 %1880  ;;  %v1414_v56 = vadd.f32 %v4928_v36, %v1413_v51 }
 0x258   :  { %v1415_v9 = vpop.f32.mrf.mxu0  ;;  %2004 = vrot.lane.b32.xlu1 %v1997_v45, %s4180_s22 }
 0x25a   :  { %v1418_v41 = vpop.f32.mrf.mxu0 }
 0x25b   :  { %2110 = vrot.lane.b32.xlu0 %v5054_v39, %s4182_s27  ;;  %v1943_v39 = vpop.permute.xlu0 %1942 }
 0x25c   :  { %v1420_v30 = vpop.f32.mrf.mxu0 }
 0x25e   :  { %v1421_v31 = vpop.f32.mrf.mxu0 }
 0x25f   :  { %2074 = vrot.lane.b32.xlu0 %v5656_v27, %s4180_s22  ;;  %v5217_v53 = vpop.permute.xlu0 %1944  ;;  %v1422_v9 = vadd.f32 %v4928_v36, %v1421_v31  ;;  %v5229_v27 = vpop.permute.xlu1 %1920 }
 0x260   :  { %v1423_v28 = vpop.f32.mrf.mxu0 }
 0x262   :  { %v5205_v3 = vpop.f32.mrf.mxu0 }
 0x263   :  { %2089 = vrot.lane.b32.xlu0 %v4981_v44, %s4181_s16  ;;  %v1734_v44 = vmax.f32 %v1414_v56, 0.0  ;;  %v5223_v2 = vpop.permute.xlu0 %1946  ;;  %v1958_v31 = vpop.permute.xlu1 %1957 }
 0x264   :  { %v1428_v42 = vpop.f32.mrf.mxu0 }
 0x265   :  { %v1835_v37 = vpack.c.bf16 %v1734_v44, %v1733_v22  ;;  %v1419_v42 = vadd.f32 %v4928_v36, %v1418_v41 }
 0x266   :  { %v1429_v35 = vpop.f32.mrf.mxu0 }
 0x267   :  { %2112 = vrot.lane.b32.xlu0 %v2102_v4, %s4182_s27  ;;  %v5226_v61 = vpop.permute.xlu0 %1948  ;;  %v1998_v45 = vrot.slane %v1835_v37, 4 }
 0x268   :  { %v1431_v20 = vpop.f32.mrf.mxu0 }
 0x26a   :  { %v1434_v21 = vpop.f32.mrf.mxu0 }
 0x26b   :  { %v1435_v32 = vadd.f32 %v4928_v36, %v1434_v21  ;;  %v1960_v56 = vpop.permute.xlu0 %1959  ;;  %v1736_v21 = vmax.f32 %v1422_v9, 0.0 }
 0x26c   :  { %v1436_v0 = vpop.f32.mrf.mxu0 }
 0x26d   :  { %v1739_v52 = vmax.f32 %v1435_v32, 0.0  ;;  %v1999_v0 = vsel %vm1870_vm0, %v1996_v29, %v1998_v45  ;;  %v1430_v29 = vadd.f32 %v4928_v36, %v1429_v35  ;;  %v4103_v35 = vld [vmem:[%s5633_s3 + $0xb8] sm:$0xff]  }
 0x26e   :  { %v1437_v4 = vpop.f32.mrf.mxu0 }
 0x26f   :  { %v1438_v5 = vadd.f32 %v4928_v36, %v1437_v4  ;;  %v1735_v4 = vmax.f32 %v1419_v42, 0.0 }
 0x270   :  { %v1439_v1 = vpop.f32.mrf.mxu0 }
 0x271   :  { %v1740_v62 = vmax.f32 %v1438_v5, 0.0  ;;  %v5237_v5 = vpop.permute.xlu0 %1961  ;;  %v1836_v1 = vpack.c.bf16 %v1736_v21, %v1735_v4  ;;  %v2120_v21 = vsel %vm2114_vm1, %v4659_v33, %v5198_v63 }
 0x272   :  { %v1442_v7 = vpop.f32.mrf.mxu0 }
 0x273   :  { %v1838_v51 = vpack.c.bf16 %v1740_v62, %v1739_v52  ;;  %v1443_v28 = vadd.f32 %v4928_v36, %v1442_v7  ;;  %v5242_v52 = vpop.permute.xlu1 %1922  ;;  %v2000_v62 = vrot.slane %v1836_v1, 4  ;;  %v2159_v7 = vsel %vm2114_vm1, %v4940_v60, %v1943_v39 }
 0x274   :  { %v1444_v30 = vpop.f32.mrf.mxu0  ;;  %v2173_v9 = vsel %vm2130_vm2, %v2159_v7, %v1958_v31  ;;  %v4110_v31 = vld [vmem:[%s5633_s3 + $0xd8] sm:$0xff]  }
 0x275   :  { %2019 = vrot.lane.b32.xlu1 %v1838_v51, %s4181_s16  ;;  %v1741_v32 = vmax.f32 %v1443_v28, 0.0  ;;  %v5240_v41 = vpop.permute.xlu0 %1963  ;;  %v2117_v51 = vsel %vm2114_vm1, %v4642_v12, %v1881_v50  ;;  %v1427_v30 = vadd.f32 %v4928_v36, %v5205_v3  ;;  %v1738_v50 = vmax.f32 %v1430_v29, 0.0 }
 0x276   :  { %v1445_v20 = vpop.f32.mrf.mxu0  ;;  %v2132_v42 = vsel %vm2130_vm2, %v2117_v51, %v5209_v25  ;;  %v4105_v25 = vld [vmem:[%s5633_s3 + $0xb0] sm:$0xff]  }
 0x277   :  { %v1446_v58 = vadd.f32 %v4928_v36, %v1445_v20  ;;  %v2143_v12 = vsel %vm2141_vm3, %v2132_v42, %v1919_v8  ;;  %v2001_v36 = vsel %vm1870_vm0, %v1998_v45, %v2000_v62  ;;  %v1887_v3 = vpop.permute.xlu1 %1886  ;;  %v1737_v39 = vmax.f32 %v1427_v30, 0.0  ;;  %v4106_v8 = vld [vmem:[%s5633_s3 + $0xe8] sm:$0xff]  }
 0x278   :  { %v1447_v44 = vpop.f32.mrf.mxu0  ;;  %v2162_v45 = vsel %vm2114_vm1, %v4957_v46, %v5217_v53  ;;  %v2126_v30 = vsel %vm2114_vm1, %v4687_v11, %v1887_v3  ;;  %v4117_v11 = vld [vmem:[%s5633_s3 + $0x80] sm:$0xff]  }
 0x279   :  { %v1742_v22 = vmax.f32 %v1446_v58, 0.0  ;;  %2006 = vrot.lane.b32.xlu1 %v1999_v0, %s4180_s22  ;;  %v1837_v58 = vpack.c.bf16 %v1738_v50, %v1737_v39  ;;  %v2175_v44 = vsel %vm2130_vm2, %v2162_v45, %v1960_v56 }
 0x27b   :  { %v1839_v37 = vpack.c.bf16 %v1742_v22, %v1741_v32  ;;  %v4107_v32 = vld [vmem:[%s5633_s3 + $0xa8] sm:$0xff]   ;;  %v2134_v22 = vsel %vm2130_vm2, %v2120_v21, %v5215_v19  ;;  %v1902_v53 = vpop.permute.xlu1 %1901  ;;  %v2002_v33 = vrot.slane %v1837_v58, 4  ;;  %v4109_v19 = vld [vmem:[%s5633_s3 + $0xa0] sm:$0xff]  }
 0x27c   :  { %v2146_v63 = vsel %vm2141_vm3, %v2134_v22, %v5229_v27  ;;  %v2165_v27 = vsel %vm2114_vm1, %v4978_v43, %v5223_v2  ;;  %v4114_v2 = vld [vmem:[%s5633_s3 + $0xc8] sm:$0xff]  }
 0x27d   :  { %2021 = vrot.lane.b32.xlu1 %v1839_v37, %s4181_s16  ;;  %v2003_v4 = vsel %vm1870_vm0, %v2000_v62, %v2002_v33  ;;  %v2177_v1 = vsel %vm2130_vm2, %v2165_v27, %v5237_v5  ;;  %v4111_v62 = vld [vmem:[%s5633_s3 + $0x98] sm:$0xff]  }
 0x27f   :  { %v1925_v37 = vpop.permute.xlu1 %1924 }
 0x281   :  { %2044 = vrot.lane.b32.xlu1 %v4809_v26, %s4182_s27  ;;  %v4104_v26 = vld [vmem:[%s5633_s3 + $0xf0] sm:$0xff]  }
 0x282   :  { %v1981_v28 = vpop.permute.xlu0 %1980 }
 0x283   :  { %v2183_v60 = vsel %vm2141_vm3, %v2173_v9, %v1981_v28  ;;  %v1889_v5 = vpop.permute.xlu1 %1888  ;;  %v2168_v9 = vsel %vm2114_vm1, %v4993_v38, %v5226_v61 }
 0x284   :  { %2572 = vmatprep.mubr.bf16.mxu1 %v2183_v60  ;;  %v2129_v50 = vsel %vm2114_vm1, %v4713_v49, %v1889_v5 }
 0x285   :  { %2008 = vrot.lane.b32.xlu1 %v2001_v36, %s4180_s22  ;;  %2573 = vmatmul.mubr.bf16.vlgmr.msra.gmra.mxu1 %v2143_v12  ;;  %v5657_v36 = vrot.slane %v4730_v23, 4 }
 0x286   :  { %v5266_v20 = vpop.permute.xlu0 %1950  ;;  %3708 = vmatpush3.bf16.msra.mxu1 %v4103_v35  ;;  %v2138_v35 = vsel %vm2130_vm2, %v2126_v30, %v1902_v53 }
 0x287   :  { %3709 = vmatprep.subr.bf16.mxu1 %v4104_v26  ;;  %v1904_v42 = vpop.permute.xlu1 %1903  ;;  %v2171_v60 = vsel %vm2114_vm1, %v5017_v10, %v5266_v20  ;;  %v2152_v38 = vsel %vm2141_vm3, %v2138_v35, %v1925_v37 }
 0x288   :  { %v2140_v39 = vsel %vm2130_vm2, %v2129_v50, %v1904_v42 }
 0x289   :  { %2023 = vrot.lane.b32.xlu1 %v4644_v13, %s4181_s16  ;;  %v4108_v13 = vld [vmem:[%s5633_s3 + $0xe0] sm:$0xff]  }
 0x28a   :  { %v1983_v0 = vpop.permute.xlu0 %1982  ;;  %3710 = vmatpush3.bf16.msra.mxu1 %v4105_v25 }
 0x28b   :  { %v2186_v46 = vsel %vm2141_vm3, %v2175_v44, %v1983_v0  ;;  %3711 = vmatprep.subr.bf16.mxu1 %v4106_v8  ;;  %v1927_v12 = vpop.permute.xlu1 %1926 }
 0x28c   :  { %2580 = vmatprep.mubr.bf16.mxu1 %v2186_v46  ;;  %v2155_v20 = vsel %vm2141_vm3, %v2140_v39, %v1927_v12 }
 0x28d   :  { %2046 = vrot.lane.b32.xlu1 %v4826_v57, %s4182_s27  ;;  %2581 = vmatmul.mubr.bf16.gmra.mxu1 %v2146_v63  ;;  %v2123_v57 = vsel %vm2114_vm1, %v4673_v54, %v5203_v17  ;;  %v4112_v54 = vld [vmem:[%s5633_s3 + $0xd0] sm:$0xff]  }
 0x28e   :  { %v1966_v56 = vpop.permute.xlu0 %1965  ;;  %3712 = vmatpush3.bf16.msra.mxu1 %v4107_v32  ;;  %v2136_v7 = vsel %vm2130_vm2, %v2123_v57, %v5220_v15  ;;  %v4113_v15 = vld [vmem:[%s5633_s3 + $0x90] sm:$0xff]   ;;  %v5658_v57 = vld [vmem:[#allocation3_spill] sm:$0xff] }
 0x28f   :  { %3713 = vmatprep.subr.bf16.mxu1 %v4108_v13  ;;  %v2149_v17 = vsel %vm2141_vm3, %v2136_v7, %v5242_v52  ;;  %v4116_v52 = vld [vmem:[%s5633_s3 + $0xc0] sm:$0xff]   ;;  %v2181_v61 = vsel %vm2130_vm2, %v2171_v60, %v1966_v56  ;;  %v2043_v44 = vpop.permute.xlu1 %2042 }
 0x291   :  { %2010 = vrot.lane.b32.xlu1 %v2003_v4, %s4180_s22 }
 0x292   :  { %v1985_v29 = vpop.permute.xlu0 %1984  ;;  %3714 = vmatpush3.bf16.msra.mxu1 %v4109_v19 }
 0x293   :  { %v2189_v43 = vsel %vm2141_vm3, %v2177_v1, %v1985_v29  ;;  %3715 = vmatprep.subr.bf16.mxu1 %v4110_v31 }
 0x294   :  { %2588 = vmatprep.mubr.bf16.mxu1 %v2189_v43 }
 0x295   :  { %2025 = vrot.lane.b32.xlu1 %v4661_v34, %s4181_s16  ;;  %2589 = vmatmul.mubr.bf16.gmra.mxu1 %v2149_v17  ;;  %v4115_v34 = vld [vmem:[%s5633_s3 + $0x88] sm:$0xff]  }
 0x296   :  { %3716 = vmatpush3.bf16.msra.mxu1 %v4111_v62 }
 0x297   :  { %3717 = vmatprep.subr.bf16.mxu1 %v4112_v54 }
 0x299   :  { %2048 = vrot.lane.b32.xlu1 %v4844_v24, %s4182_s27  ;;  %v1989_v51 = vpop.permute.xlu0 %1988  ;;  %v2179_v24 = vsel %vm2130_vm2, %v2168_v9, %v5240_v41 }
 0x29a   :  { %3718 = vmatpush3.bf16.msra.mxu1 %v4113_v15  ;;  %v2195_v41 = vsel %vm2141_vm3, %v2181_v61, %v1989_v51 }
 0x29b   :  { %3719 = vmatprep.subr.bf16.mxu1 %v4114_v2  ;;  %v5659_v2 = vld [vmem:[#allocation4_spill] sm:$0xff] }
 0x29d   :  { %2012 = vrot.lane.b32.xlu1 %v2002_v33, %s4180_s22  ;;  %v1987_v28 = vpop.permute.xlu0 %1986 }
 0x29e   :  { %v2192_v26 = vsel %vm2141_vm3, %v2179_v24, %v1987_v28  ;;  %3720 = vmatpush3.bf16.msra.mxu1 %v4115_v34 }
 0x29f   :  { %2596 = vmatprep.mubr.bf16.mxu1 %v2192_v26  ;;  %3721 = vmatprep.subr.bf16.mxu1 %v4116_v52 }
 0x2a0   :  { %2597 = vmatmul.mubr.bf16.gmra.mxu1 %v2152_v38 }
 0x2a1   :  { %2027 = vrot.lane.b32.xlu1 %v4675_v55, %s4181_s16  ;;  %v2067_v10 = vpop.permute.xlu0 %2066  ;;  %2604 = vmatprep.mubr.bf16.mxu1 %v2195_v41 }
 0x2a2   :  { %3722 = vmatpush3.bf16.msra.mxu1 %v4117_v11  ;;  %v2239_v25 = vsel %vm2114_vm1, %v4744_v48, %v2067_v10 }
 0x2a5   :  { %2050 = vrot.lane.b32.xlu1 %v5657_v36, %s4182_s27  ;;  %v2082_v3 = vpop.permute.xlu0 %2081 }
 0x2a6   :  { %v2253_v55 = vsel %vm2130_vm2, %v2239_v25, %v2082_v3 }
 0x2a8   :  { %2605 = vmatmul.mubr.bf16.gmra.mxu1 %v2155_v20 }
 0x2a9   :  { %v2105_v8 = vpop.permute.xlu0 %2104 }
 0x2aa   :  { %v2263_v58 = vsel %vm2141_vm3, %v2253_v55, %v2105_v8 }
 0x2ab   :  { %2644 = vmatprep.mubr.bf16.mxu1 %v2263_v58 }
 0x2ad   :  { %v2069_v49 = vpop.permute.xlu0 %2068 }
 0x2ae   :  { %v2242_v48 = vsel %vm2114_vm1, %v4760_v16, %v2069_v49 }
 0x2b1   :  { %v2084_v45 = vpop.permute.xlu0 %2083 }
 0x2b2   :  { %v2255_v33 = vsel %vm2130_vm2, %v2242_v48, %v2084_v45 }
 0x2b5   :  { %v2107_v21 = vpop.permute.xlu0 %2106 }
 0x2b6   :  { %v2266_v56 = vsel %vm2141_vm3, %v2255_v33, %v2107_v21 }
 0x2b9   :  { %v2071_v23 = vpop.permute.xlu0 %2070 }
 0x2ba   :  { %v2245_v16 = vsel %vm2114_vm1, %v5658_v57, %v2071_v23  ;;  %v4122_v57 = vld [vmem:[%s5634_s5 + $0x68] sm:$0xff]  }
 0x2bd   :  { %v2086_v0 = vpop.permute.xlu0 %2085 }
 0x2be   :  { %v2257_v29 = vsel %vm2130_vm2, %v2245_v16, %v2086_v0 }
 0x2c1   :  { %v2109_v22 = vpop.permute.xlu0 %2108 }
 0x2c2   :  { %v2269_v7 = vsel %vm2141_vm3, %v2257_v29, %v2109_v22 }
 0x2c5   :  { %v2073_v31 = vpop.permute.xlu0 %2072 }
 0x2c6   :  { %v2248_v5 = vsel %vm2114_vm1, %v5659_v2, %v2073_v31  ;;  %v4120_v31 = vld [vmem:[%s5634_s5 + $0x70] sm:$0xff]   ;;  %v4127_v2 = vld [vmem:[%s5634_s5 + $0x18] sm:$0xff]  }
 0x2c9   :  { %v2088_v27 = vpop.permute.xlu0 %2087 }
 0x2ca   :  { %v2005_v32 = vpop.permute.xlu1 %2004  ;;  %v2259_v52 = vsel %vm2130_vm2, %v2248_v5, %v2088_v27  ;;  %v4121_v27 = vld [vmem:[%s5634_s5 + $0x30] sm:$0xff]  }
 0x2cb   :  { %v2199_v46 = vsel %vm2114_vm1, %v5145_v6, %v2005_v32  ;;  %v4128_v5 = vld [vmem:[%s5634_s5 + $0x50] sm:$0xff]  }
 0x2cd   :  { %v2111_v54 = vpop.permute.xlu0 %2110 }
 0x2ce   :  { %v2272_v30 = vsel %vm2141_vm3, %v2259_v52, %v2111_v54 }
 0x2d1   :  { %v2075_v15 = vpop.permute.xlu0 %2074 }
 0x2d2   :  { %v2251_v60 = vsel %vm2114_vm1, %v4812_v40, %v2075_v15 }
 0x2d5   :  { %v2090_v28 = vpop.permute.xlu0 %2089 }
 0x2d6   :  { %v2261_v38 = vsel %vm2130_vm2, %v2251_v60, %v2090_v28  ;;  %v4131_v28 = vld [vmem:[%s5634_s5 + $0x8] sm:$0xff]  }
 0x2d9   :  { %v2113_v42 = vpop.permute.xlu0 %2112 }
 0x2da   :  { %v2275_v41 = vsel %vm2141_vm3, %v2261_v38, %v2113_v42  ;;  %v4133_v38 = vld [vmem:[%s5634_s5] sm:$0xff]  }
 0x2e7   :  { %v2020_v13 = vpop.permute.xlu1 %2019 }
 0x2e8   :  { %v2213_v53 = vsel %vm2130_vm2, %v2199_v46, %v2020_v13 }
 0x2e9   :  { %v2223_v63 = vsel %vm2141_vm3, %v2213_v53, %v2043_v44 }
 0x2ea   :  { %2645 = vmatmul.mubr.bf16.vlgmr.msra.gmra.mxu1 %v2223_v63  ;;  %v4118_v63 = vld [vmem:[%s5634_s5 + $0x78] sm:$0xff]  }
 0x2eb   :  { %v2007_v19 = vpop.permute.xlu1 %2006  ;;  %2652 = vmatprep.mubr.bf16.mxu1 %v2266_v56  ;;  %3753 = vmatprep.subr.bf16.mxu1 %v4118_v63 }
 0x2ec   :  { %v2202_v6 = vsel %vm2114_vm1, %v5154_v47, %v2007_v19  ;;  %v4119_v19 = vld [vmem:[%s5634_s5 + $0x38] sm:$0xff]  }
 0x2ed   :  { %3754 = vmatpush3.bf16.msra.mxu1 %v4119_v19 }
 0x2ee   :  { %3755 = vmatprep.subr.bf16.mxu1 %v4120_v31 }
 0x2ef   :  { %v2022_v4 = vpop.permute.xlu1 %2021 }
 0x2f0   :  { %v2215_v37 = vsel %vm2130_vm2, %v2202_v6, %v2022_v4 }
 0x2f1   :  { %3756 = vmatpush3.bf16.msra.mxu1 %v4121_v27 }
 0x2f2   :  { %3757 = vmatprep.subr.bf16.mxu1 %v4122_v57 }
 0x2f3   :  { %v2045_v1 = vpop.permute.xlu1 %2044 }
 0x2f4   :  { %v2226_v62 = vsel %vm2141_vm3, %v2215_v37, %v2045_v1  ;;  %v4123_v1 = vld [vmem:[%s5634_s5 + $0x28] sm:$0xff]  }
 0x2f5   :  { %2653 = vmatmul.mubr.bf16.gmra.mxu1 %v2226_v62  ;;  %v4124_v62 = vld [vmem:[%s5634_s5 + $0x60] sm:$0xff]  }
 0x2f6   :  { %2660 = vmatprep.mubr.bf16.mxu1 %v2269_v7  ;;  %v5443_v7 = vld [vmem:[%s5635_s4] ss:$0 sm:$0xff]  ;;  %3758 = vmatpush3.bf16.msra.mxu1 %v4123_v1 }
 0x2f7   :  { %v2009_v43 = vpop.permute.xlu1 %2008  ;;  %3759 = vmatprep.subr.bf16.mxu1 %v4124_v62 }
 0x2f8   :  { %v2205_v47 = vsel %vm2114_vm1, %v5162_v59, %v2009_v43 }
 0x2fb   :  { %v2024_v17 = vpop.permute.xlu1 %2023 }
 0x2fc   :  { %v2217_v51 = vsel %vm2130_vm2, %v2205_v47, %v2024_v17  ;;  %v4125_v17 = vld [vmem:[%s5634_s5 + $0x20] sm:$0xff]   ;;  %v4126_v47 = vld [vmem:[%s5634_s5 + $0x58] sm:$0xff]  }
 0x2fd   :  { %3760 = vmatpush3.bf16.msra.mxu1 %v4125_v17 }
 0x2fe   :  { %3761 = vmatprep.subr.bf16.mxu1 %v4126_v47 }
 0x2ff   :  { %v2047_v34 = vpop.permute.xlu1 %2046 }
 0x300   :  { %v2229_v9 = vsel %vm2141_vm3, %v2217_v51, %v2047_v34  ;;  %v4129_v51 = vld [vmem:[%s5634_s5 + $0x10] sm:$0xff]  }
 0x301   :  { %2661 = vmatmul.mubr.bf16.gmra.mxu1 %v2229_v9 }
 0x302   :  { %2668 = vmatprep.mubr.bf16.mxu1 %v2272_v30  ;;  %3762 = vmatpush3.bf16.msra.mxu1 %v4127_v2 }
 0x303   :  { %v2011_v24 = vpop.permute.xlu1 %2010  ;;  %3763 = vmatprep.subr.bf16.mxu1 %v4128_v5 }
 0x304   :  { %v2208_v59 = vsel %vm2114_vm1, %v5173_v18, %v2011_v24  ;;  %v4130_v24 = vld [vmem:[%s5634_s5 + $0x48] sm:$0xff]  }
 0x306   :  { %3764 = vmatpush3.bf16.msra.mxu1 %v4129_v51 }
 0x307   :  { %v2026_v35 = vpop.permute.xlu1 %2025  ;;  %3765 = vmatprep.subr.bf16.mxu1 %v4130_v24 }
 0x308   :  { %v2219_v26 = vsel %vm2130_vm2, %v2208_v59, %v2026_v35  ;;  %v4132_v35 = vld [vmem:[%s5634_s5 + $0x40] sm:$0xff]  }
 0x30a   :  { %3766 = vmatpush3.bf16.msra.mxu1 %v4131_v28 }
 0x30b   :  { %v2049_v11 = vpop.permute.xlu1 %2048  ;;  %3767 = vmatprep.subr.bf16.mxu1 %v4132_v35 }
 0x30c   :  { %v2232_v61 = vsel %vm2141_vm3, %v2219_v26, %v2049_v11 }
 0x30d   :  { %2669 = vmatmul.mubr.bf16.gmra.mxu1 %v2232_v61 }
 0x30e   :  { %2676 = vmatprep.mubr.bf16.mxu1 %v2275_v41  ;;  %3768 = vmatpush3.bf16.msra.mxu1 %v4133_v38  ;;  %v4140_v38 = vld [vmem:[%s5634_s5 + $0xe0] sm:$0xff]  }
 0x30f   :  { %v2013_v10 = vpop.permute.xlu1 %2012 }
 0x310   :  { %v2211_v50 = vsel %vm2114_vm1, %v5187_v14, %v2013_v10 }
 0x313   :  { %v2028_v12 = vpop.permute.xlu1 %2027 }
 0x314   :  { %v2221_v18 = vsel %vm2130_vm2, %v2211_v50, %v2028_v12 }
 0x317   :  { %v2051_v36 = vpop.permute.xlu1 %2050 }
 0x318   :  { %v2235_v40 = vsel %vm2141_vm3, %v2221_v18, %v2051_v36 }
 0x319   :  { %2677 = vmatmul.mubr.bf16.gmra.mxu1 %v2235_v40  ;;  %v4134_v40 = vld [vmem:[%s5634_s5 + $0xf8] sm:$0xff]  }
 0x31a   :  { %3775 = vmatprep.subr.bf16.mxu1 %v4134_v40  ;;  %v4147_v40 = vld [vmem:[%s5634_s5 + $0x88] sm:$0xff]  }
 0x345   :  { %v3677_v3 = vpop.f32.mrf.mxu1 }
 0x347   :  { %v3678_v39 = vpop.f32.mrf.mxu1 }
 0x348   :  { %v3679_v20 = vadd.f32 %v3678_v39, %v3677_v3 }
 0x349   :  { %v3680_v25 = vpop.f32.mrf.mxu1 }
 0x34a   :  { %v2575_v42 = vadd.f32 %v3679_v20, %v5443_v7 }
 0x34b   :  { %v3681_v55 = vpop.f32.mrf.mxu1 }
 0x34c   :  { %v3682_v8 = vadd.f32 %v3681_v55, %v3680_v25 }
 0x34d   :  { %v3683_v58 = vpop.f32.mrf.mxu1 }
 0x34e   :  { %v2578_v60 = vadd.f32 %v3682_v8, %v5443_v7 }
 0x34f   :  { %v3684_v49 = vpop.f32.mrf.mxu1 }
 0x350   :  { %v5407_v45 = vadd.f32 %v3684_v49, %v3683_v58 }
 0x351   :  { %v3686_v21 = vpop.f32.mrf.mxu1 }
 0x352   :  { %v2583_v20 = vadd.f32 %v5407_v45, %v5443_v7 }
 0x353   :  { %v3687_v23 = vpop.f32.mrf.mxu1 }
 0x354   :  { %v5409_v44 = vadd.f32 %v3687_v23, %v3686_v21 }
 0x355   :  { %v3689_v14 = vpop.f32.mrf.mxu1 }
 0x356   :  { %v2586_v55 = vadd.f32 %v5409_v44, %v5443_v7 }
 0x357   :  { %v3690_v0 = vpop.f32.mrf.mxu1 }
 0x358   :  { %v5411_v32 = vadd.f32 %v3690_v0, %v3689_v14 }
 0x359   :  { %v3692_v22 = vpop.f32.mrf.mxu1 }
 0x35a   :  { %v2591_v45 = vadd.f32 %v5411_v32, %v5443_v7 }
 0x35b   :  { %v3693_v46 = vpop.f32.mrf.mxu1 }
 0x35c   :  { %v5413_v13 = vadd.f32 %v3693_v46, %v3692_v22 }
 0x35e   :  { %v2594_v44 = vadd.f32 %v5413_v13, %v5443_v7 }
 0x360   :  { %v3695_v48 = vpop.f32.mrf.mxu1 }
 0x362   :  { %v3696_v53 = vpop.f32.mrf.mxu1 }
 0x363   :  { %v5415_v33 = vadd.f32 %v3696_v53, %v3695_v48 }
 0x364   :  { %v3698_v56 = vpop.f32.mrf.mxu1 }
 0x365   :  { %v2599_v32 = vadd.f32 %v5415_v33, %v5443_v7 }
 0x366   :  { %v3699_v4 = vpop.f32.mrf.mxu1 }
 0x367   :  { %v5429_v6 = vadd.f32 %v3699_v4, %v3698_v56 }
 0x368   :  { %v3701_v16 = vpop.f32.mrf.mxu1 }
 0x369   :  { %v2602_v13 = vadd.f32 %v5429_v6, %v5443_v7  ;;  %v4135_v6 = vld [vmem:[%s5634_s5 + $0xb8] sm:$0xff]  }
 0x36a   :  { %v3702_v37 = vpop.f32.mrf.mxu1 }
 0x36b   :  { %v3703_v29 = vadd.f32 %v3702_v37, %v3701_v16 }
 0x36c   :  { %v3704_v43 = vpop.f32.mrf.mxu1 }
 0x36d   :  { %v5446_v54 = vadd.f32 %v3703_v29, %v5443_v7 }
 0x36e   :  { %v3705_v15 = vpop.f32.mrf.mxu1 }
 0x3aa   :  { %v3723_v34 = vpop.f32.mrf.mxu1 }
 0x3ac   :  { %v3724_v52 = vpop.f32.mrf.mxu1 }
 0x3ad   :  { %v3725_v9 = vadd.f32 %v3724_v52, %v3723_v34 }
 0x3ae   :  { %v3726_v30 = vpop.f32.mrf.mxu1 }
 0x3af   :  { %v2647_v26 = vadd.f32 %v3725_v9, %v2575_v42 }
 0x3b0   :  { %v3727_v59 = vpop.f32.mrf.mxu1 }
 0x3b1   :  { %v3728_v11 = vadd.f32 %v3727_v59, %v3726_v30  ;;  %v2684_v41 = vmax.f32 %v2647_v26, 0.0  ;;  %v4136_v59 = vld [vmem:[%s5634_s5 + $0xf0] sm:$0xff]   ;;  %v4138_v26 = vld [vmem:[%s5634_s5 + $0xe8] sm:$0xff]  }
 0x3b3   :  { %v2650_v61 = vadd.f32 %v3728_v11, %v2578_v60  ;;  %v4139_v11 = vld [vmem:[%s5634_s5 + $0xa8] sm:$0xff]  }
 0x3b5   :  { %v2685_v10 = vmax.f32 %v2650_v61, 0.0  ;;  %v3729_v12 = vpop.f32.mrf.mxu1  ;;  %v4141_v61 = vld [vmem:[%s5634_s5 + $0xa0] sm:$0xff]  }
 0x3b7   :  { %v2693_v50 = vpack.c.bf16 %v2685_v10, %v2684_v41  ;;  %v3730_v18 = vpop.f32.mrf.mxu1  ;;  %v4142_v41 = vld [vmem:[%s5634_s5 + $0xd8] sm:$0xff]  }
 0x3b8   :  { %v3731_v36 = vadd.f32 %v3730_v18, %v3729_v12  ;;  %v4143_v10 = vld [vmem:[%s5634_s5 + $0x98] sm:$0xff]   ;;  %v4144_v12 = vld [vmem:[%s5634_s5 + $0xd0] sm:$0xff]   ;;  %v4146_v18 = vld [vmem:[%s5634_s5 + $0xc8] sm:$0xff]  }
 0x3b9   :  { %v3732_v3 = vpop.f32.mrf.mxu1  ;;  %v2699_v39 = vrot.slane %v2693_v50, 4 }
 0x3ba   :  { %v2655_v8 = vadd.f32 %v3731_v36, %v2583_v20  ;;  %v4149_v20 = vld [vmem:[%s5634_s5 + $0x80] sm:$0xff]  }
 0x3bb   :  { %v3733_v25 = vpop.f32.mrf.mxu1  ;;  %2700 = vrot.lane.b32.xlu1 %v2699_v39, %s4181_s16  ;;  %v4148_v39 = vld [vmem:[%s5634_s5 + $0xc0] sm:$0xff]  }
 0x3bc   :  { %v3734_v58 = vadd.f32 %v3733_v25, %v3732_v3  ;;  %v2686_v21 = vmax.f32 %v2655_v8, 0.0  ;;  %v4183_v8 = vmov 0.0  }
 0x3be   :  { %v2658_v49 = vadd.f32 %v3734_v58, %v2586_v55  ;;  %v4150_v55 = vld [vmem:[%s5634_s5 + $0x118] sm:$0xff]  }
 0x3c0   :  { %v2687_v23 = vmax.f32 %v2658_v49, 0.0  ;;  %v4151_v49 = vld [vmem:[%s5634_s5 + $0x110] sm:$0xff]  }
 0x3c1   :  { %v3735_v14 = vpop.f32.mrf.mxu1 }
 0x3c2   :  { %v2694_v0 = vpack.c.bf16 %v2687_v23, %v2686_v21  ;;  %v4152_v21 = vld [vmem:[%s5634_s5 + $0x108] sm:$0xff]   ;;  %v4153_v23 = vld [vmem:[%s5634_s5 + $0x100] sm:$0xff]  }
 0x3c3   :  { %v3736_v22 = vpop.f32.mrf.mxu1 }
 0x3c4   :  { %v3737_v46 = vadd.f32 %v3736_v22, %v3735_v14  ;;  %v2703_v48 = vrot.slane %v2694_v0, 4  ;;  %v5660_v22 = vmov 0  }
 0x3c5   :  { %v3738_v53 = vpop.f32.mrf.mxu1 }
 0x3c6   :  { %2704 = vrot.lane.b32.xlu0 %v2703_v48, %s4181_s16  ;;  %v2663_v56 = vadd.f32 %v3737_v46, %v2591_v45  ;;  %v4156_v46 = vld [vmem:[%s5636_s7 + $0x64] ss:$16 sps:$4 sm:$0xff]   ;;  %v4154_v48 = vld [vmem:[%s5636_s7 + $0x60] ss:$16 sps:$4 sm:$0xff]  }
 0x3c7   :  { %v3739_v63 = vpop.f32.mrf.mxu1  ;;  %v4157_v45 = vld [vmem:[%s5636_s7 + $0x40] ss:$16 sps:$4 sm:$0xff]  }
 0x3c8   :  { %v3740_v19 = vadd.f32 %v3739_v63, %v3738_v53  ;;  %v2688_v4 = vmax.f32 %v2663_v56, 0.0  ;;  %v4159_v53 = vld [vmem:[%s5636_s7 + $0x44] ss:$16 sps:$4 sm:$0xff]  }
 0x3c9   :  { %v4162_v63 = vld [vmem:[%s5636_s7 + $0x24] ss:$16 sps:$4 sm:$0xff]  }
 0x3ca   :  { %v2666_v31 = vadd.f32 %v3740_v19, %v2594_v44  ;;  %v4160_v44 = vld [vmem:[%s5636_s7 + $0x20] ss:$16 sps:$4 sm:$0xff]   ;;  %v4165_v56 = vld [vmem:[%s5636_s7 + $0x4] ss:$16 sps:$4 sm:$0xff]  }
 0x3cb   :  { %v4163_v19 = vld [vmem:[%s5636_s7] ss:$16 sps:$4 sm:$0xff]  }
 0x3cc   :  { %v2689_v27 = vmax.f32 %v2666_v31, 0.0  ;;  %v4168_v31 = vld [vmem:[%s5636_s7 + $0x6c] ss:$16 sps:$4 sm:$0xff]  }
 0x3cd   :  { %v3741_v57 = vpop.f32.mrf.mxu1 }
 0x3ce   :  { %v5490_v16 = vpack.c.bf16 %v2689_v27, %v2688_v4 }
 0x3cf   :  { %v3742_v37 = vpop.f32.mrf.mxu1 }
 0x3d0   :  { %v3743_v1 = vadd.f32 %v3742_v37, %v3741_v57  ;;  %v2707_v29 = vrot.slane %v5490_v16, 4 }
 0x3d1   :  { %v3744_v62 = vpop.f32.mrf.mxu1 }
 0x3d2   :  { %2708 = vrot.lane.b32.xlu1 %v2707_v29, %s4181_s16  ;;  %v2671_v17 = vadd.f32 %v3743_v1, %v2599_v32 }
 0x3d3   :  { %v3745_v43 = vpop.f32.mrf.mxu1 }
 0x3d4   :  { %v3746_v15 = vadd.f32 %v3745_v43, %v3744_v62  ;;  %v2690_v2 = vmax.f32 %v2671_v17, 0.0  ;;  %v3604_v43 = vld [vmem:[%s5637_s6] ss:$0 sm:$0xff] }
 0x3d6   :  { %v2674_v47 = vadd.f32 %v3746_v15, %v2602_v13 }
 0x3d8   :  { %v2691_v5 = vmax.f32 %v2674_v47, 0.0 }
 0x3d9   :  { %v3747_v51 = vpop.f32.mrf.mxu1 }
 0x3da   :  { %v2696_v34 = vpack.c.bf16 %v2691_v5, %v2690_v2 }
 0x3db   :  { %v3748_v52 = vpop.f32.mrf.mxu1 }
 0x3dc   :  { %v3749_v9 = vadd.f32 %v3748_v52, %v3747_v51  ;;  %v2711_v30 = vrot.slane %v2696_v34, 4  ;;  %v4166_v52 = vld [vmem:[%s5636_s7 + $0x68] ss:$16 sps:$4 sm:$0xff]  }
 0x3dd   :  { %v3750_v24 = vpop.f32.mrf.mxu1 }
 0x3de   :  { %v2679_v28 = vadd.f32 %v3749_v9, %v5446_v54  ;;  %2712 = vrot.lane.b32.xlu0 %v2711_v30, %s4181_s16  ;;  %v4137_v54 = vld [vmem:[%s5634_s5 + $0xb0] sm:$0xff]   ;;  %v4171_v30 = vld [vmem:[%s5636_s7 + $0x4c] ss:$16 sps:$4 sm:$0xff]  }
 0x3df   :  { %v3751_v33 = vpop.f32.mrf.mxu1 }
 0x3e0   :  { %v2692_v14 = vmax.f32 %v2679_v28, 0.0  ;;  %v4169_v28 = vld [vmem:[%s5636_s7 + $0x48] ss:$16 sps:$4 sm:$0xff]   ;;  %v4174_v33 = vld [vmem:[%s5636_s7 + $0x2c] ss:$16 sps:$4 sm:$0xff]  }
 0x42d   :  { %v2701_v35 = vpop.permute.xlu1 %2700 }
 0x42e   :  { %v2716_v60 = vsel %vm2130_vm2, %v2693_v50, %v2701_v35  ;;  %v4145_v50 = vld [vmem:[%s5634_s5 + $0x90] sm:$0xff]   ;;  %v4172_v35 = vld [vmem:[%s5636_s7 + $0x28] ss:$16 sps:$4 sm:$0xff]  }
 0x438   :  { %v2705_v42 = vpop.permute.xlu0 %2704 }
 0x439   :  { %v2720_v7 = vsel %vm2130_vm2, %v2694_v0, %v2705_v42  ;;  %v2697_v0 = vpack.c.bf16 %v2692_v14, %v2692_v14  ;;  %v4177_v42 = vld [vmem:[%s5636_s7 + $0xc] ss:$16 sps:$4 sm:$0xff]  }
 0x43a   :  { %3060 = vmatprep.mubr.bf16.mxu1 %v2720_v7  ;;  %v16_v7 = vstv %s5638_s10 }
 0x43b   :  { %3061 = vmatmul.mubr.bf16.vlgmr.msra.gmra.mxu1 %v2716_v60  ;;  %17 = vst [vmem:[#allocation2] sm:$0x1] %v16_v7 }
 0x43c   :  { %3776 = vmatpush3.bf16.msra.mxu1 %v4135_v6  ;;  %v4175_v6 = vld [vmem:[%s5636_s7 + $0x8] ss:$16 sps:$4 sm:$0xff]  }
 0x43d   :  { %3777 = vmatprep.subr.bf16.mxu1 %v4136_v59  ;;  %v3168_v59 = vlaneseq }
 0x43f   :  { %v3169_v60 = vshrl.u32 %v3168_v59, 7 }
 0x440   :  { %3778 = vmatpush3.bf16.msra.mxu1 %v4137_v54 }
 0x441   :  { %3779 = vmatprep.subr.bf16.mxu1 %v4138_v26  ;;  %v3174_v26 = vsub.s32 1, %v3169_v60 }
 0x444   :  { %3780 = vmatpush3.bf16.msra.mxu1 %v4139_v11  ;;  %v2709_v25 = vpop.permute.xlu1 %2708 }
 0x445   :  { %3781 = vmatprep.subr.bf16.mxu1 %v4140_v38  ;;  %v2724_v58 = vsel %vm2130_vm2, %v5490_v16, %v2709_v25  ;;  %v3170_v38 = vsub.s32 0, %v3169_v60 }
 0x448   :  { %3782 = vmatpush3.bf16.msra.mxu1 %v4141_v61  ;;  %v3166_v61 = vld [vmem:[%s5639_s8] sm:$0xf] }
 0x449   :  { %3783 = vmatprep.subr.bf16.mxu1 %v4142_v41 }
 0x44c   :  { %3784 = vmatpush3.bf16.msra.mxu1 %v4143_v10  ;;  %v3175_v10 = vrot.slane %v3166_v61, %v3174_v26 }
 0x44d   :  { %3785 = vmatprep.subr.bf16.mxu1 %v4144_v12 }
 0x450   :  { %3786 = vmatpush3.bf16.msra.mxu1 %v4145_v50  ;;  %v2713_v36 = vpop.permute.xlu0 %2712  ;;  %v3171_v50 = vrot.slane %v3166_v61, %v3170_v38 }
 0x451   :  { %3787 = vmatprep.subr.bf16.mxu1 %v4146_v18  ;;  %v2728_v3 = vsel %vm2130_vm2, %v2696_v34, %v2713_v36  ;;  %v3178_v36 = vsub.s32 2, %v3169_v60 }
 0x452   :  { %3100 = vmatprep.mubr.bf16.mxu1 %v2728_v3  ;;  %v3182_v3 = vsub.s32 3, %v3169_v60 }
 0x454   :  { %3788 = vmatpush3.bf16.msra.mxu1 %v4147_v40 }
 0x455   :  { %3789 = vmatprep.subr.bf16.mxu1 %v4148_v39  ;;  %v3357_v39 = vld [vmem:[%s5640_s9] sm:$0xf] }
 0x456   :  { %v3366_v25 = vrot.slane %v3357_v39, %v3174_v26 }
 0x458   :  { %3790 = vmatpush3.bf16.msra.mxu1 %v4149_v20 }
 0x459   :  { %3802 = vmatprep.subr.bf16.mxu1 %v4183_v8 }
 0x45b   :  { %3101 = vmatmul.mubr.bf16.vlgmr.msra.gmra.mxu1 %v2724_v58  ;;  %v3362_v58 = vrot.slane %v3357_v39, %v3170_v38 }
 0x45c   :  { %3803 = vmatpush3.bf16.msra.mxu1 %v4150_v55  ;;  %3810 = vmatprep.mubr.msk.bf16.mxu1 %vm4184_vm4, %v4183_v8  ;;  %v3179_v55 = vrot.slane %v3166_v61, %v3178_v36 }
 0x45d   :  { %3804 = vmatprep.subr.bf16.mxu1 %v4183_v8 }
 0x460   :  { %3805 = vmatpush3.bf16.msra.mxu1 %v4151_v49  ;;  %v3183_v49 = vrot.slane %v3166_v61, %v3182_v3 }
 0x461   :  { %3806 = vmatprep.subr.bf16.mxu1 %v4183_v8 }
 0x464   :  { %3807 = vmatpush3.bf16.msra.mxu1 %v4152_v21 }
 0x465   :  { %3808 = vmatprep.subr.bf16.mxu1 %v4183_v8 }
 0x468   :  { %3809 = vmatpush3.bf16.msra.mxu1 %v4153_v23 }
 0x469   :  { %3279 = vmatprep.subr.bf16.mxu1 %v4156_v46 }
 0x46b   :  { %3811 = vmatmul.mubr.msk.bf16.vlgmr.msra.gmra.mxu1 %vm2130_vm2, %v2697_v0  ;;  %v3370_v0 = vrot.slane %v3357_v39, %v3178_v36 }
 0x46c   :  { %3303 = vmatprep.mubr.bf16.mxu1 %v5660_v22  ;;  %3280 = vmatpush1.bf16.msra.mxu1 %v4154_v48 }
 0x46d   :  { %3281 = vmatprep.subr.bf16.mxu1 %v4159_v53 }
 0x470   :  { %3282 = vmatpush1.bf16.msra.mxu1 %v4157_v45  ;;  %v3374_v45 = vrot.slane %v3357_v39, %v3182_v3 }
 0x471   :  { %3283 = vmatprep.subr.bf16.mxu1 %v4162_v63 }
 0x474   :  { %3284 = vmatpush1.bf16.msra.mxu1 %v4160_v44 }
 0x475   :  { %3285 = vmatprep.subr.bf16.mxu1 %v4165_v56 }
 0x478   :  { %3286 = vmatpush1.bf16.msra.mxu1 %v4163_v19 }
 0x479   :  { %3320 = vmatprep.subr.bf16.mxu1 %v4168_v31 }
 0x4fb   :  { %v3769_v4 = vpop.f32.mrf.mxu1 }
 0x4fd   :  { %v3770_v27 = vpop.f32.mrf.mxu1 }
 0x4fe   :  { %v3771_v32 = vadd.f32 %v3770_v27, %v3769_v4 }
 0x4ff   :  { %v3772_v57 = vpop.f32.mrf.mxu1 }
 0x500   :  { %v3063_v17 = vadd.f32 %v3771_v32, %v3604_v43 }
 0x501   :  { %v3773_v16 = vpop.f32.mrf.mxu1 }
 0x502   :  { %v3660_v16 = vld [vmem:[#allocation2] ss:$0 sm:$0xff] }
 0x51b   :  { %v3791_v37 = vpop.f32.mrf.mxu1 }
 0x51d   :  { %v3792_v1 = vpop.f32.mrf.mxu1 }
 0x51e   :  { %v3793_v13 = vadd.f32 %v3792_v1, %v3791_v37 }
 0x51f   :  { %v3794_v29 = vpop.f32.mrf.mxu1 }
 0x520   :  { %v3103_v15 = vadd.f32 %v3793_v13, %v3063_v17  ;;  %v3397_v29 = vand.u32 127, %v3168_v59 }
 0x521   :  { %v3795_v62 = vpop.f32.mrf.mxu1 }
 0x522   :  { %vm3398_vm5 = vcmp.eq.s32.totalorder %v3397_v29, 0 }
 0x52b   :  { %v3142_v47 = vpop.f32.mrf.mxu1 }
 0x52c   :  { %v3143_v2 = vadd.f32 %v3142_v47, %v3103_v15 }
 0x52d   :  { %v3812_v5 = vpop.f32.mrf.mxu1 }
 0x52e   :  { %v3148_v51 = vmax.f32 %v3143_v2, 0.0 }
 0x52f   :  { %v3145_v34 = vpop.f32.mrf.mxu1 }
 0x530   :  { %v3149_v9 = vpack.c.bf16 %v3148_v51, %v3148_v51 }
 0x531   :  { %v3813_v24 = vpop.f32.mrf.mxu1 }
 0x532   :  { %3658 = vmatmul.mubr.msk.bf16.vlgmr.msra.gmra.mxu1 %vm2130_vm2, %v3149_v9 }
 0x533   :  { %3321 = vmatpush1.bf16.msra.mxu1 %v4166_v52  ;;  %3344 = vmatprep.mubr.bf16.mxu1 %v5660_v22 }
 0x534   :  { %3322 = vmatprep.subr.bf16.mxu1 %v4171_v30 }
 0x537   :  { %3323 = vmatpush1.bf16.msra.mxu1 %v4169_v28 }
 0x538   :  { %3324 = vmatprep.subr.bf16.mxu1 %v4174_v33 }
 0x53b   :  { %3325 = vmatpush1.bf16.msra.mxu1 %v4172_v35 }
 0x53c   :  { %3326 = vmatprep.subr.bf16.mxu1 %v4177_v42 }
 0x53f   :  { %3327 = vmatpush1.bf16.msra.mxu1 %v4175_v6 }
 0x542   :  { %3659 = vmatmul.mubr.msk.bf16.vlgmr.msra.gmra.mxu1 %vm2130_vm2, %v3149_v9 }
 0x5f2   :  { %v3305_v54 = vpop.f32.mrf.mxu1 }
 0x5f3   :  { %v3306_v40 = vadd.f32 %v3305_v54, %v3171_v50 }
 0x5f4   :  { %v3307_v11 = vpop.f32.mrf.mxu1 }
 0x5f5   :  { %v3308_v18 = vadd.f32 %v3307_v11, %v3175_v10  ;;  %v3353_v8 = vmax.f32 %v3306_v40, 0.0 }
 0x5f6   :  { %v3309_v41 = vpop.f32.mrf.mxu1 }
 0x5f7   :  { %v3354_v20 = vmax.f32 %v3308_v18, 0.0  ;;  %v3379_v46 = vmul.f32 %v3362_v58, %v3353_v8 }
 0x5f8   :  { %v3310_v12 = vpop.f32.mrf.mxu1 }
 0x5f9   :  { %v3380_v23 = vmul.f32 %v3366_v25, %v3354_v20 }
 0x5fb   :  { %v3383_v44 = vadd.f32 %v3380_v23, %v3379_v46 }
 0x602   :  { %v3346_v21 = vpop.f32.mrf.mxu1 }
 0x603   :  { %v3347_v14 = vadd.f32 %v3346_v21, %v3179_v55 }
 0x604   :  { %v3348_v22 = vpop.f32.mrf.mxu1 }
 0x605   :  { %v3355_v48 = vmax.f32 %v3347_v14, 0.0  ;;  %v3349_v53 = vadd.f32 %v3348_v22, %v3183_v49 }
 0x606   :  { %v3350_v63 = vpop.f32.mrf.mxu1 }
 0x607   :  { %v3381_v56 = vmul.f32 %v3370_v0, %v3355_v48  ;;  %v3356_v19 = vmax.f32 %v3349_v53, 0.0 }
 0x608   :  { %v3351_v31 = vpop.f32.mrf.mxu1 }
 0x609   :  { %v3382_v4 = vmul.f32 %v3374_v45, %v3356_v19  ;;  %v3384_v27 = vadd.f32 %v3383_v44, %v3381_v56 }
 0x60b   :  { %v3385_v57 = vadd.f32 %v3384_v27, %v3382_v4 }
 0x60d   :  { %3386 = vadd.xlane.f32.xlu0 %v3385_v57 }
 0x696   :  { %v3387_v37 = vpop.xlane.xlu0 %3386 }
 0x697   :  { %v3395_v1 = vadd.f32 %v3660_v16, %v3387_v37 }
 0x699   :  { %3401 = vperm.xlu1 %3852, %v3395_v1  }
 0x714   :  { %v3402_v62 = vpop.permute.xlu1 %3401 }
 0x715   :  { %v3404_v32 = vsel %vm3398_vm5, %v3402_v62, 0.0 }
 0x716   :  { %3405 = vst [vmem:[%s5641_s11] sm:$0xff] %v3404_v32 }

</bundles_post_ra>
